<compile_context>
chip_gen: v6e
topology: v6e:2x2x1
jax: 0.10.0
libtpu: 0.0.40
codegen_flags: <defaults>
</compile_context>

<pallas_src>
import math
import functools

import jax
import jax.numpy as jnp
from jax import lax
from jax.experimental import pallas as pl
from jax.experimental.pallas import tpu as pltpu


# ----------------------------------------------------------------------------
# helpers
# ----------------------------------------------------------------------------
def _layer_norm(x, g, b, eps=1e-5):
    mu = jnp.mean(x, axis=-1, keepdims=True)
    var = jnp.mean((x - mu) ** 2, axis=-1, keepdims=True)
    return (x - mu) * lax.rsqrt(var + eps) * g + b


def _dot(a, b):
    return jnp.dot(a, b, preferred_element_type=jnp.float32)


def _dot_t(a, b):
    # a @ b.T with the transpose folded into the MXU contraction (no XLU transpose)
    return lax.dot_general(a, b, (((1,), (1,)), ((), ())),
                           preferred_element_type=jnp.float32)


# ----------------------------------------------------------------------------
# Fused kernel: projections + Linformer attention + LN + FFN + LN
# ----------------------------------------------------------------------------
def _blocks_kernel(x_ref, e_ref, f_ref,
                   wqt_ref, bq_ref, wkt_ref, bk_ref, wvt_ref, bv_ref,
                   ln1g_ref, ln1b_ref,
                   w1t_ref, b1_ref, a_ref, w2t_ref, b2_ref,
                   ln2g_ref, ln2b_ref,
                   o_ref, att_ref,
                   *, B, N, K, n_head, head_dim):
    Nh = N // n_head                 # query rows per head (in the weird .view layout)
    Kh = K // n_head                 # key/value rows per head
    hd = head_dim
    inv_sqrt = 1.0 / math.sqrt(head_dim)

    x = x_ref[...]                                        # (B*N, D)

    # --- Q projection for the whole batch in one matmul (weights pre-transposed) ---
    q = _dot(x, wqt_ref[...]) + bq_ref[...]               # (B*N, D)

    e_w = e_ref[...]                                      # (K, N)
    f_w = f_ref[...]                                      # (K, N)
    wkt = wkt_ref[...]
    wvt = wvt_ref[...]
    bk = bk_ref[...]
    bv = bv_ref[...]

    # --- per-batch K/V (sequence-compressed) projections + per-head attention ---
    for b in range(B):
        x_b = x[b * N:(b + 1) * N, :]                     # (N, D)
        k_b = _dot(_dot(e_w, x_b), wkt) + bk              # (K, D)
        v_b = _dot(_dot(f_w, x_b), wvt) + bv              # (K, D)

        for h in range(n_head):
            # NOTE: this reproduces the PyTorch row-major .view(B, n_head, -1, head_dim)
            # exactly: head h's q4 rows come from q rows [h*Nh, (h+1)*Nh) split into
            # lane halves; same for k/v with Kh.  Do NOT "fix" to canonical MHA.
            q_h = q[b * N + h * Nh: b * N + (h + 1) * Nh, :]   # (Nh, D)
            k_h = k_b[h * Kh:(h + 1) * Kh, :]                  # (Kh, D)
            v_h = v_b[h * Kh:(h + 1) * Kh, :]                  # (Kh, D)

            for cq in range(n_head):
                qc = q_h[:, cq * hd:(cq + 1) * hd]             # (Nh, hd)
                s = [_dot_t(qc, k_h[:, ck * hd:(ck + 1) * hd]) * inv_sqrt
                     for ck in range(n_head)]                  # n_head x (Nh, Kh)
                m = jnp.max(s[0], axis=-1, keepdims=True)
                for ck in range(1, n_head):
                    m = jnp.maximum(m, jnp.max(s[ck], axis=-1, keepdims=True))
                p = [jnp.exp(sc - m) for sc in s]
                denom = p[0].sum(axis=-1, keepdims=True)
                for ck in range(1, n_head):
                    denom = denom + p[ck].sum(axis=-1, keepdims=True)
                acc = _dot(p[0], v_h[:, 0:hd])
                for ck in range(1, n_head):
                    acc = acc + _dot(p[ck], v_h[:, ck * hd:(ck + 1) * hd])
                out_half = acc * pl.reciprocal(denom, approx=True)
                att_ref[b * N + h * Nh: b * N + (h + 1) * Nh,
                        cq * hd:(cq + 1) * hd] = out_half

    att = att_ref[...]                                    # (B*N, D)

    # --- residual + attention LayerNorm (dropout = identity, eval mode) ---
    y = _layer_norm(att + x, ln1g_ref[...], ln1b_ref[...])

    # --- FFN: Linear -> PReLU(0.2) -> Linear (dropout = identity) ---
    hvar = _dot(y, w1t_ref[...]) + b1_ref[...]            # (B*N, 2D)
    a = a_ref[0, 0]                                       # PReLU slope (SMEM scalar)
    hvar = jnp.where(hvar >= 0.0, hvar, a * hvar)
    z = _dot(hvar, w2t_ref[...]) + b2_ref[...]            # (B*N, D)

    # --- residual + FFN LayerNorm ---
    o_ref[...] = _layer_norm(z + y, ln2g_ref[...], ln2b_ref[...])


# ----------------------------------------------------------------------------
# Wrapper
# ----------------------------------------------------------------------------
@functools.partial(jax.jit, static_argnames=("n_head", "head_dim"))
def blocks_forward(x, p, *, n_head, head_dim):
    B, N, D = x.shape
    K = p["e_w"].shape[0]
    D2 = p["w1"].shape[0]
    assert D == n_head * head_dim
    # The row-major .view head split is handled with aligned slices; requires:
    assert N % n_head == 0 and K % n_head == 0

    f32 = jnp.float32
    x2d = x.reshape(B * N, D)                             # free leading-dim collapse
    # Pre-transpose weights on the host: kernel does jnp.dot(x, w) with no .T
    wqT, wkT, wvT = p["wq"].T, p["wk"].T, p["wv"].T
    w1T, w2T = p["w1"].T, p["w2"].T

    def full(shape):                                      # whole array, single block
        nd = len(shape)
        return pl.BlockSpec(shape, lambda i, nd=nd: (0,) * nd)

    smem_scalar = pl.BlockSpec((1, 1), lambda i: (0, 0),
                               memory_space=pltpu.MemorySpace.SMEM)

    kernel = functools.partial(_blocks_kernel, B=B, N=N, K=K,
                               n_head=n_head, head_dim=head_dim)

    out2d = pl.pallas_call(
        kernel,
        out_shape=jax.ShapeDtypeStruct((B * N, D), f32),
        grid=(1,),                                        # whole problem in one step
        in_specs=[
            full((B * N, D)),                             # x
            full((K, N)), full((K, N)),                   # E, F
            full((D, D)), full((1, D)),                   # WqT, bq
            full((D, D)), full((1, D)),                   # WkT, bk
            full((D, D)), full((1, D)),                   # WvT, bv
            full((1, D)), full((1, D)),                   # ln1 gamma, beta
            full((D, D2)), full((1, D2)),                 # W1T, b1
            smem_scalar,                                  # PReLU slope (scalar in SMEM)
            full((D2, D)), full((1, D)),                  # W2T, b2
            full((1, D)), full((1, D)),                   # ln2 gamma, beta
        ],
        out_specs=full((B * N, D)),
        scratch_shapes=[pltpu.VMEM((B * N, D), f32)],     # attention output stays in VMEM
        compiler_params=pltpu.CompilerParams(
            dimension_semantics=("arbitrary",)),
    )(x2d, p["e_w"], p["f_w"],
      wqT, p["bq"], wkT, p["bk"], wvT, p["bv"],
      p["ln1_g"], p["ln1_b"],
      w1T, p["b1"], p["prelu_a"], w2T, p["b2"],
      p["ln2_g"], p["ln2_b"])
    return out2d.reshape(B, N, D)


# ----------------------------------------------------------------------------
# Pure-JAX reference (mirrors the PyTorch forward, eval mode)
# ----------------------------------------------------------------------------
def blocks_ref(x, p, *, n_head, head_dim):
    B, N, D = x.shape
    K = p["e_w"].shape[0]
    ek = jnp.einsum("kn,bnd->bkd", p["e_w"], x)
    fv = jnp.einsum("kn,bnd->bkd", p["f_w"], x)
    q = x @ p["wq"].T + p["bq"]
    k = ek @ p["wk"].T + p["bk"]
    v = fv @ p["wv"].T + p["bv"]
    q4 = q.reshape(B, n_head, N, head_dim)
    k4 = k.reshape(B, n_head, K, head_dim)
    v4 = v.reshape(B, n_head, K, head_dim)
    s = jnp.einsum("bhmd,bhnd->bhmn", q4, k4) / math.sqrt(head_dim)
    pr = jax.nn.softmax(s, axis=-1)
    att = jnp.einsum("bhmn,bhnd->bhmd", pr, v4).reshape(B, N, D)
    y = _layer_norm(att + x, p["ln1_g"], p["ln1_b"])
    h = y @ p["w1"].T + p["b1"]
    h = jnp.where(h >= 0.0, h, p["prelu_a"] * h)
    z = h @ p["w2"].T + p["b2"]
    return _layer_norm(z + y, p["ln2_g"], p["ln2_b"])


# ----------------------------------------------------------------------------
if __name__ == "__main__":
    # hyper_parameter: n_head=2, head_dim=16 -> d_model=32, max_len=8, k=4
    B, n_head, head_dim, N, K = 2, 2, 16, 8, 4
    D = n_head * head_dim
    D2 = 2 * D

    key = jax.random.PRNGKey(0)
    ks = jax.random.split(key, 13)
    f32 = jnp.float32

    params = {
        "e_w": 0.1 * jax.random.normal(ks[0], (K, N), f32),   # nn.Linear(max_len, k, bias=False)
        "f_w": 0.1 * jax.random.normal(ks[1], (K, N), f32),
        "wq": 0.1 * jax.random.normal(ks[2], (D, D), f32),
        "bq": 0.1 * jax.random.normal(ks[3], (1, D), f32),
        "wk": 0.1 * jax.random.normal(ks[4], (D, D), f32),
        "bk": 0.1 * jax.random.normal(ks[5], (1, D), f32),
        "wv": 0.1 * jax.random.normal(ks[6], (D, D), f32),
        "bv": 0.1 * jax.random.normal(ks[7], (1, D), f32),
        "ln1_g": jnp.ones((1, D), f32),
        "ln1_b": jnp.zeros((1, D), f32),
        "w1": 0.1 * jax.random.normal(ks[8], (D2, D), f32),   # Linear(d_model, 2*d_model)
        "b1": 0.1 * jax.random.normal(ks[9], (1, D2), f32),
        "prelu_a": jnp.full((1, 1), 0.2, f32),                # PReLU(init=0.2)
        "w2": 0.1 * jax.random.normal(ks[10], (D, D2), f32),  # Linear(2*d_model, d_model)
        "b2": 0.1 * jax.random.normal(ks[11], (1, D), f32),
        "ln2_g": jnp.ones((1, D), f32),
        "ln2_b": jnp.zeros((1, D), f32),
    }

    x = jax.random.normal(ks[12], (B, N, D), f32)

    out = blocks_forward(x, params, n_head=n_head, head_dim=head_dim)
    out = jax.block_until_ready(out)

    ref = blocks_ref(x, params, n_head=n_head, head_dim=head_dim)
    assert out.shape == (B, N, D)
    assert jnp.allclose(out, ref, atol=1e-2, rtol=1e-2), float(jnp.max(jnp.abs(out - ref)))

    print("KERNEL_OK")
</pallas_src>

<mosaic_0001>
module attributes {stable_mosaic.version = 11 : i64} {
  func.func @_blocks_kernel(%arg0: i32, %arg1: memref<16x32xf32, #tpu.memory_space<vmem>>, %arg2: memref<4x8xf32, #tpu.memory_space<vmem>>, %arg3: memref<4x8xf32, #tpu.memory_space<vmem>>, %arg4: memref<32x32xf32, #tpu.memory_space<vmem>>, %arg5: memref<1x32xf32, #tpu.memory_space<vmem>>, %arg6: memref<32x32xf32, #tpu.memory_space<vmem>>, %arg7: memref<1x32xf32, #tpu.memory_space<vmem>>, %arg8: memref<32x32xf32, #tpu.memory_space<vmem>>, %arg9: memref<1x32xf32, #tpu.memory_space<vmem>>, %arg10: memref<1x32xf32, #tpu.memory_space<vmem>>, %arg11: memref<1x32xf32, #tpu.memory_space<vmem>>, %arg12: memref<32x64xf32, #tpu.memory_space<vmem>>, %arg13: memref<1x64xf32, #tpu.memory_space<vmem>>, %arg14: memref<1x1xf32, #tpu.memory_space<smem>>, %arg15: memref<64x32xf32, #tpu.memory_space<vmem>>, %arg16: memref<1x32xf32, #tpu.memory_space<vmem>>, %arg17: memref<1x32xf32, #tpu.memory_space<vmem>>, %arg18: memref<1x32xf32, #tpu.memory_space<vmem>>, %arg19: memref<16x32xf32, #tpu.memory_space<vmem>>, %arg20: memref<16x32xf32, #tpu.memory_space<vmem>>) attributes {dimension_semantics = [#tpu.dimension_semantics<arbitrary>], iteration_bounds = array<i64: 1>, scalar_prefetch = 0 : i64, scratch_operands = 1 : i64, tpu.core_type = #tpu.core_type<tc>, window_params = [{pipeline_mode = #tpu.pipeline_mode<synchronous>, transform_indices = @transform_0, window_bounds = array<i64: 16, 32>}, {pipeline_mode = #tpu.pipeline_mode<synchronous>, transform_indices = @transform_1, window_bounds = array<i64: 4, 8>}, {pipeline_mode = #tpu.pipeline_mode<synchronous>, transform_indices = @transform_2, window_bounds = array<i64: 4, 8>}, {pipeline_mode = #tpu.pipeline_mode<synchronous>, transform_indices = @transform_3, window_bounds = array<i64: 32, 32>}, {pipeline_mode = #tpu.pipeline_mode<synchronous>, transform_indices = @transform_4, window_bounds = array<i64: 1, 32>}, {pipeline_mode = #tpu.pipeline_mode<synchronous>, transform_indices = @transform_5, window_bounds = array<i64: 32, 32>}, {pipeline_mode = #tpu.pipeline_mode<synchronous>, transform_indices = @transform_6, window_bounds = array<i64: 1, 32>}, {pipeline_mode = #tpu.pipeline_mode<synchronous>, transform_indices = @transform_7, window_bounds = array<i64: 32, 32>}, {pipeline_mode = #tpu.pipeline_mode<synchronous>, transform_indices = @transform_8, window_bounds = array<i64: 1, 32>}, {pipeline_mode = #tpu.pipeline_mode<synchronous>, transform_indices = @transform_9, window_bounds = array<i64: 1, 32>}, {pipeline_mode = #tpu.pipeline_mode<synchronous>, transform_indices = @transform_10, window_bounds = array<i64: 1, 32>}, {pipeline_mode = #tpu.pipeline_mode<synchronous>, transform_indices = @transform_11, window_bounds = array<i64: 32, 64>}, {pipeline_mode = #tpu.pipeline_mode<synchronous>, transform_indices = @transform_12, window_bounds = array<i64: 1, 64>}, {transform_indices = @transform_13, window_bounds = array<i64: 1, 1>}, {pipeline_mode = #tpu.pipeline_mode<synchronous>, transform_indices = @transform_14, window_bounds = array<i64: 64, 32>}, {pipeline_mode = #tpu.pipeline_mode<synchronous>, transform_indices = @transform_15, window_bounds = array<i64: 1, 32>}, {pipeline_mode = #tpu.pipeline_mode<synchronous>, transform_indices = @transform_16, window_bounds = array<i64: 1, 32>}, {pipeline_mode = #tpu.pipeline_mode<synchronous>, transform_indices = @transform_17, window_bounds = array<i64: 1, 32>}, {pipeline_mode = #tpu.pipeline_mode<synchronous>, transform_indices = @transform_18, window_bounds = array<i64: 16, 32>}]} {
    %c0 = arith.constant 0 : index
    %c0_0 = arith.constant 0 : index
    %0 = vector.load %arg1[%c0, %c0_0] : memref<16x32xf32, #tpu.memory_space<vmem>>, vector<16x32xf32>
    %c0_1 = arith.constant 0 : index
    %c0_2 = arith.constant 0 : index
    %1 = vector.load %arg4[%c0_1, %c0_2] : memref<32x32xf32, #tpu.memory_space<vmem>>, vector<32x32xf32>
    %cst = arith.constant dense<0.000000e+00> : vector<16x32xf32>
    %2 = tpu.matmul %0, %1, %cst {dimension_numbers = #tpu.dot_dimension_numbers<[1], [0], [0], [1], [0, 0, 1, 1], [], []>} : vector<16x32xf32>, vector<32x32xf32>, vector<16x32xf32> -> vector<16x32xf32>
    %c0_3 = arith.constant 0 : index
    %c0_4 = arith.constant 0 : index
    %3 = vector.load %arg5[%c0_3, %c0_4] : memref<1x32xf32, #tpu.memory_space<vmem>>, vector<1x32xf32>
    %4 = vector.broadcast %3 : vector<1x32xf32> to vector<16x32xf32>
    %5 = arith.addf %2, %4 : vector<16x32xf32>
    %c0_5 = arith.constant 0 : index
    %c0_6 = arith.constant 0 : index
    %6 = vector.load %arg2[%c0_5, %c0_6] : memref<4x8xf32, #tpu.memory_space<vmem>>, vector<4x8xf32>
    %c0_7 = arith.constant 0 : index
    %c0_8 = arith.constant 0 : index
    %7 = vector.load %arg3[%c0_7, %c0_8] : memref<4x8xf32, #tpu.memory_space<vmem>>, vector<4x8xf32>
    %c0_9 = arith.constant 0 : index
    %c0_10 = arith.constant 0 : index
    %8 = vector.load %arg6[%c0_9, %c0_10] : memref<32x32xf32, #tpu.memory_space<vmem>>, vector<32x32xf32>
    %c0_11 = arith.constant 0 : index
    %c0_12 = arith.constant 0 : index
    %9 = vector.load %arg8[%c0_11, %c0_12] : memref<32x32xf32, #tpu.memory_space<vmem>>, vector<32x32xf32>
    %c0_13 = arith.constant 0 : index
    %c0_14 = arith.constant 0 : index
    %10 = vector.load %arg7[%c0_13, %c0_14] : memref<1x32xf32, #tpu.memory_space<vmem>>, vector<1x32xf32>
    %c0_15 = arith.constant 0 : index
    %c0_16 = arith.constant 0 : index
    %11 = vector.load %arg9[%c0_15, %c0_16] : memref<1x32xf32, #tpu.memory_space<vmem>>, vector<1x32xf32>
    %12 = vector.extract_strided_slice %0 {offsets = [0, 0], sizes = [8, 32], strides = [1, 1]} : vector<16x32xf32> to vector<8x32xf32>
    %cst_17 = arith.constant dense<0.000000e+00> : vector<4x32xf32>
    %13 = tpu.matmul %6, %12, %cst_17 {dimension_numbers = #tpu.dot_dimension_numbers<[1], [0], [0], [1], [0, 0, 1, 1], [], []>} : vector<4x8xf32>, vector<8x32xf32>, vector<4x32xf32> -> vector<4x32xf32>
    %cst_18 = arith.constant dense<0.000000e+00> : vector<4x32xf32>
    %14 = tpu.matmul %13, %8, %cst_18 {dimension_numbers = #tpu.dot_dimension_numbers<[1], [0], [0], [1], [0, 0, 1, 1], [], []>} : vector<4x32xf32>, vector<32x32xf32>, vector<4x32xf32> -> vector<4x32xf32>
    %15 = vector.broadcast %10 : vector<1x32xf32> to vector<4x32xf32>
    %16 = arith.addf %14, %15 : vector<4x32xf32>
    %cst_19 = arith.constant dense<0.000000e+00> : vector<4x32xf32>
    %17 = tpu.matmul %7, %12, %cst_19 {dimension_numbers = #tpu.dot_dimension_numbers<[1], [0], [0], [1], [0, 0, 1, 1], [], []>} : vector<4x8xf32>, vector<8x32xf32>, vector<4x32xf32> -> vector<4x32xf32>
    %cst_20 = arith.constant dense<0.000000e+00> : vector<4x32xf32>
    %18 = tpu.matmul %17, %9, %cst_20 {dimension_numbers = #tpu.dot_dimension_numbers<[1], [0], [0], [1], [0, 0, 1, 1], [], []>} : vector<4x32xf32>, vector<32x32xf32>, vector<4x32xf32> -> vector<4x32xf32>
    %19 = vector.broadcast %11 : vector<1x32xf32> to vector<4x32xf32>
    %20 = arith.addf %18, %19 : vector<4x32xf32>
    %21 = vector.extract_strided_slice %5 {offsets = [0, 0], sizes = [4, 32], strides = [1, 1]} : vector<16x32xf32> to vector<4x32xf32>
    %22 = vector.extract_strided_slice %16 {offsets = [0, 0], sizes = [2, 32], strides = [1, 1]} : vector<4x32xf32> to vector<2x32xf32>
    %23 = vector.extract_strided_slice %20 {offsets = [0, 0], sizes = [2, 32], strides = [1, 1]} : vector<4x32xf32> to vector<2x32xf32>
    %24 = vector.extract_strided_slice %21 {offsets = [0, 0], sizes = [4, 16], strides = [1, 1]} : vector<4x32xf32> to vector<4x16xf32>
    %25 = vector.extract_strided_slice %22 {offsets = [0, 0], sizes = [2, 16], strides = [1, 1]} : vector<2x32xf32> to vector<2x16xf32>
    %cst_21 = arith.constant dense<0.000000e+00> : vector<4x2xf32>
    %26 = tpu.matmul %24, %25, %cst_21 {dimension_numbers = #tpu.dot_dimension_numbers<[1], [1], [0], [0], [0, 0, 1, 0], [], []>} : vector<4x16xf32>, vector<2x16xf32>, vector<4x2xf32> -> vector<4x2xf32>
    %cst_22 = arith.constant 2.500000e-01 : f32
    %27 = vector.broadcast %cst_22 : f32 to vector<4x2xf32>
    %28 = arith.mulf %26, %27 : vector<4x2xf32>
    %29 = vector.extract_strided_slice %22 {offsets = [0, 16], sizes = [2, 16], strides = [1, 1]} : vector<2x32xf32> to vector<2x16xf32>
    %cst_23 = arith.constant dense<0.000000e+00> : vector<4x2xf32>
    %30 = tpu.matmul %24, %29, %cst_23 {dimension_numbers = #tpu.dot_dimension_numbers<[1], [1], [0], [0], [0, 0, 1, 0], [], []>} : vector<4x16xf32>, vector<2x16xf32>, vector<4x2xf32> -> vector<4x2xf32>
    %cst_24 = arith.constant 2.500000e-01 : f32
    %31 = vector.broadcast %cst_24 : f32 to vector<4x2xf32>
    %32 = arith.mulf %30, %31 : vector<4x2xf32>
    %cst_25 = arith.constant dense<0xFF800000> : vector<4xf32>
    %33 = vector.multi_reduction <maximumf>, %28, %cst_25 [1] : vector<4x2xf32> to vector<4xf32>
    %34 = vector.shape_cast %33 : vector<4xf32> to vector<4x1xf32>
    %cst_26 = arith.constant dense<0xFF800000> : vector<4xf32>
    %35 = vector.multi_reduction <maximumf>, %32, %cst_26 [1] : vector<4x2xf32> to vector<4xf32>
    %36 = vector.shape_cast %35 : vector<4xf32> to vector<4x1xf32>
    %37 = arith.maximumf %34, %36 : vector<4x1xf32>
    %38 = vector.broadcast %37 : vector<4x1xf32> to vector<4x2xf32>
    %39 = arith.subf %28, %38 : vector<4x2xf32>
    %40 = math.exp %39 : vector<4x2xf32>
    %41 = vector.broadcast %37 : vector<4x1xf32> to vector<4x2xf32>
    %42 = arith.subf %32, %41 : vector<4x2xf32>
    %43 = math.exp %42 : vector<4x2xf32>
    %cst_27 = arith.constant dense<0.000000e+00> : vector<4xf32>
    %44 = vector.multi_reduction <add>, %40, %cst_27 [1] : vector<4x2xf32> to vector<4xf32>
    %45 = vector.shape_cast %44 : vector<4xf32> to vector<4x1xf32>
    %cst_28 = arith.constant dense<0.000000e+00> : vector<4xf32>
    %46 = vector.multi_reduction <add>, %43, %cst_28 [1] : vector<4x2xf32> to vector<4xf32>
    %47 = vector.shape_cast %46 : vector<4xf32> to vector<4x1xf32>
    %48 = arith.addf %45, %47 : vector<4x1xf32>
    %49 = vector.extract_strided_slice %23 {offsets = [0, 0], sizes = [2, 16], strides = [1, 1]} : vector<2x32xf32> to vector<2x16xf32>
    %cst_29 = arith.constant dense<0.000000e+00> : vector<4x16xf32>
    %50 = tpu.matmul %40, %49, %cst_29 {dimension_numbers = #tpu.dot_dimension_numbers<[1], [0], [0], [1], [0, 0, 1, 1], [], []>} : vector<4x2xf32>, vector<2x16xf32>, vector<4x16xf32> -> vector<4x16xf32>
    %51 = vector.extract_strided_slice %23 {offsets = [0, 16], sizes = [2, 16], strides = [1, 1]} : vector<2x32xf32> to vector<2x16xf32>
    %cst_30 = arith.constant dense<0.000000e+00> : vector<4x16xf32>
    %52 = tpu.matmul %43, %51, %cst_30 {dimension_numbers = #tpu.dot_dimension_numbers<[1], [0], [0], [1], [0, 0, 1, 1], [], []>} : vector<4x2xf32>, vector<2x16xf32>, vector<4x16xf32> -> vector<4x16xf32>
    %53 = arith.addf %50, %52 : vector<4x16xf32>
    %54 = tpu.reciprocal %48 {approx = true} : vector<4x1xf32> -> vector<4x1xf32>
    %55 = vector.broadcast %54 : vector<4x1xf32> to vector<4x16xf32>
    %56 = arith.mulf %53, %55 : vector<4x16xf32>
    %c0_31 = arith.constant 0 : index
    %c0_32 = arith.constant 0 : index
    %57 = vector.load %arg20[%c0_31, %c0_32] : memref<16x32xf32, #tpu.memory_space<vmem>>, vector<4x16xf32>
    tpu.vector_store %arg20[%c0_31, %c0_32], %56 {strides = array<i32>} : memref<16x32xf32, #tpu.memory_space<vmem>>, vector<4x16xf32>,
    %58 = vector.extract_strided_slice %21 {offsets = [0, 16], sizes = [4, 16], strides = [1, 1]} : vector<4x32xf32> to vector<4x16xf32>
    %59 = vector.extract_strided_slice %22 {offsets = [0, 0], sizes = [2, 16], strides = [1, 1]} : vector<2x32xf32> to vector<2x16xf32>
    %cst_33 = arith.constant dense<0.000000e+00> : vector<4x2xf32>
    %60 = tpu.matmul %58, %59, %cst_33 {dimension_numbers = #tpu.dot_dimension_numbers<[1], [1], [0], [0], [0, 0, 1, 0], [], []>} : vector<4x16xf32>, vector<2x16xf32>, vector<4x2xf32> -> vector<4x2xf32>
    %cst_34 = arith.constant 2.500000e-01 : f32
    %61 = vector.broadcast %cst_34 : f32 to vector<4x2xf32>
    %62 = arith.mulf %60, %61 : vector<4x2xf32>
    %63 = vector.extract_strided_slice %22 {offsets = [0, 16], sizes = [2, 16], strides = [1, 1]} : vector<2x32xf32> to vector<2x16xf32>
    %cst_35 = arith.constant dense<0.000000e+00> : vector<4x2xf32>
    %64 = tpu.matmul %58, %63, %cst_35 {dimension_numbers = #tpu.dot_dimension_numbers<[1], [1], [0], [0], [0, 0, 1, 0], [], []>} : vector<4x16xf32>, vector<2x16xf32>, vector<4x2xf32> -> vector<4x2xf32>
    %cst_36 = arith.constant 2.500000e-01 : f32
    %65 = vector.broadcast %cst_36 : f32 to vector<4x2xf32>
    %66 = arith.mulf %64, %65 : vector<4x2xf32>
    %cst_37 = arith.constant dense<0xFF800000> : vector<4xf32>
    %67 = vector.multi_reduction <maximumf>, %62, %cst_37 [1] : vector<4x2xf32> to vector<4xf32>
    %68 = vector.shape_cast %67 : vector<4xf32> to vector<4x1xf32>
    %cst_38 = arith.constant dense<0xFF800000> : vector<4xf32>
    %69 = vector.multi_reduction <maximumf>, %66, %cst_38 [1] : vector<4x2xf32> to vector<4xf32>
    %70 = vector.shape_cast %69 : vector<4xf32> to vector<4x1xf32>
    %71 = arith.maximumf %68, %70 : vector<4x1xf32>
    %72 = vector.broadcast %71 : vector<4x1xf32> to vector<4x2xf32>
    %73 = arith.subf %62, %72 : vector<4x2xf32>
    %74 = math.exp %73 : vector<4x2xf32>
    %75 = vector.broadcast %71 : vector<4x1xf32> to vector<4x2xf32>
    %76 = arith.subf %66, %75 : vector<4x2xf32>
    %77 = math.exp %76 : vector<4x2xf32>
    %cst_39 = arith.constant dense<0.000000e+00> : vector<4xf32>
    %78 = vector.multi_reduction <add>, %74, %cst_39 [1] : vector<4x2xf32> to vector<4xf32>
    %79 = vector.shape_cast %78 : vector<4xf32> to vector<4x1xf32>
    %cst_40 = arith.constant dense<0.000000e+00> : vector<4xf32>
    %80 = vector.multi_reduction <add>, %77, %cst_40 [1] : vector<4x2xf32> to vector<4xf32>
    %81 = vector.shape_cast %80 : vector<4xf32> to vector<4x1xf32>
    %82 = arith.addf %79, %81 : vector<4x1xf32>
    %83 = vector.extract_strided_slice %23 {offsets = [0, 0], sizes = [2, 16], strides = [1, 1]} : vector<2x32xf32> to vector<2x16xf32>
    %cst_41 = arith.constant dense<0.000000e+00> : vector<4x16xf32>
    %84 = tpu.matmul %74, %83, %cst_41 {dimension_numbers = #tpu.dot_dimension_numbers<[1], [0], [0], [1], [0, 0, 1, 1], [], []>} : vector<4x2xf32>, vector<2x16xf32>, vector<4x16xf32> -> vector<4x16xf32>
    %85 = vector.extract_strided_slice %23 {offsets = [0, 16], sizes = [2, 16], strides = [1, 1]} : vector<2x32xf32> to vector<2x16xf32>
    %cst_42 = arith.constant dense<0.000000e+00> : vector<4x16xf32>
    %86 = tpu.matmul %77, %85, %cst_42 {dimension_numbers = #tpu.dot_dimension_numbers<[1], [0], [0], [1], [0, 0, 1, 1], [], []>} : vector<4x2xf32>, vector<2x16xf32>, vector<4x16xf32> -> vector<4x16xf32>
    %87 = arith.addf %84, %86 : vector<4x16xf32>
    %88 = tpu.reciprocal %82 {approx = true} : vector<4x1xf32> -> vector<4x1xf32>
    %89 = vector.broadcast %88 : vector<4x1xf32> to vector<4x16xf32>
    %90 = arith.mulf %87, %89 : vector<4x16xf32>
    %c0_43 = arith.constant 0 : index
    %c16 = arith.constant 16 : index
    %91 = vector.load %arg20[%c0_43, %c16] : memref<16x32xf32, #tpu.memory_space<vmem>>, vector<4x16xf32>
    tpu.vector_store %arg20[%c0_43, %c16], %90 {strides = array<i32>} : memref<16x32xf32, #tpu.memory_space<vmem>>, vector<4x16xf32>,
    %92 = vector.extract_strided_slice %5 {offsets = [4, 0], sizes = [4, 32], strides = [1, 1]} : vector<16x32xf32> to vector<4x32xf32>
    %93 = vector.extract_strided_slice %16 {offsets = [2, 0], sizes = [2, 32], strides = [1, 1]} : vector<4x32xf32> to vector<2x32xf32>
    %94 = vector.extract_strided_slice %20 {offsets = [2, 0], sizes = [2, 32], strides = [1, 1]} : vector<4x32xf32> to vector<2x32xf32>
    %95 = vector.extract_strided_slice %92 {offsets = [0, 0], sizes = [4, 16], strides = [1, 1]} : vector<4x32xf32> to vector<4x16xf32>
    %96 = vector.extract_strided_slice %93 {offsets = [0, 0], sizes = [2, 16], strides = [1, 1]} : vector<2x32xf32> to vector<2x16xf32>
    %cst_44 = arith.constant dense<0.000000e+00> : vector<4x2xf32>
    %97 = tpu.matmul %95, %96, %cst_44 {dimension_numbers = #tpu.dot_dimension_numbers<[1], [1], [0], [0], [0, 0, 1, 0], [], []>} : vector<4x16xf32>, vector<2x16xf32>, vector<4x2xf32> -> vector<4x2xf32>
    %cst_45 = arith.constant 2.500000e-01 : f32
    %98 = vector.broadcast %cst_45 : f32 to vector<4x2xf32>
    %99 = arith.mulf %97, %98 : vector<4x2xf32>
    %100 = vector.extract_strided_slice %93 {offsets = [0, 16], sizes = [2, 16], strides = [1, 1]} : vector<2x32xf32> to vector<2x16xf32>
    %cst_46 = arith.constant dense<0.000000e+00> : vector<4x2xf32>
    %101 = tpu.matmul %95, %100, %cst_46 {dimension_numbers = #tpu.dot_dimension_numbers<[1], [1], [0], [0], [0, 0, 1, 0], [], []>} : vector<4x16xf32>, vector<2x16xf32>, vector<4x2xf32> -> vector<4x2xf32>
    %cst_47 = arith.constant 2.500000e-01 : f32
    %102 = vector.broadcast %cst_47 : f32 to vector<4x2xf32>
    %103 = arith.mulf %101, %102 : vector<4x2xf32>
    %cst_48 = arith.constant dense<0xFF800000> : vector<4xf32>
    %104 = vector.multi_reduction <maximumf>, %99, %cst_48 [1] : vector<4x2xf32> to vector<4xf32>
    %105 = vector.shape_cast %104 : vector<4xf32> to vector<4x1xf32>
    %cst_49 = arith.constant dense<0xFF800000> : vector<4xf32>
    %106 = vector.multi_reduction <maximumf>, %103, %cst_49 [1] : vector<4x2xf32> to vector<4xf32>
    %107 = vector.shape_cast %106 : vector<4xf32> to vector<4x1xf32>
    %108 = arith.maximumf %105, %107 : vector<4x1xf32>
    %109 = vector.broadcast %108 : vector<4x1xf32> to vector<4x2xf32>
    %110 = arith.subf %99, %109 : vector<4x2xf32>
    %111 = math.exp %110 : vector<4x2xf32>
    %112 = vector.broadcast %108 : vector<4x1xf32> to vector<4x2xf32>
    %113 = arith.subf %103, %112 : vector<4x2xf32>
    %114 = math.exp %113 : vector<4x2xf32>
    %cst_50 = arith.constant dense<0.000000e+00> : vector<4xf32>
    %115 = vector.multi_reduction <add>, %111, %cst_50 [1] : vector<4x2xf32> to vector<4xf32>
    %116 = vector.shape_cast %115 : vector<4xf32> to vector<4x1xf32>
    %cst_51 = arith.constant dense<0.000000e+00> : vector<4xf32>
    %117 = vector.multi_reduction <add>, %114, %cst_51 [1] : vector<4x2xf32> to vector<4xf32>
    %118 = vector.shape_cast %117 : vector<4xf32> to vector<4x1xf32>
    %119 = arith.addf %116, %118 : vector<4x1xf32>
    %120 = vector.extract_strided_slice %94 {offsets = [0, 0], sizes = [2, 16], strides = [1, 1]} : vector<2x32xf32> to vector<2x16xf32>
    %cst_52 = arith.constant dense<0.000000e+00> : vector<4x16xf32>
    %121 = tpu.matmul %111, %120, %cst_52 {dimension_numbers = #tpu.dot_dimension_numbers<[1], [0], [0], [1], [0, 0, 1, 1], [], []>} : vector<4x2xf32>, vector<2x16xf32>, vector<4x16xf32> -> vector<4x16xf32>
    %122 = vector.extract_strided_slice %94 {offsets = [0, 16], sizes = [2, 16], strides = [1, 1]} : vector<2x32xf32> to vector<2x16xf32>
    %cst_53 = arith.constant dense<0.000000e+00> : vector<4x16xf32>
    %123 = tpu.matmul %114, %122, %cst_53 {dimension_numbers = #tpu.dot_dimension_numbers<[1], [0], [0], [1], [0, 0, 1, 1], [], []>} : vector<4x2xf32>, vector<2x16xf32>, vector<4x16xf32> -> vector<4x16xf32>
    %124 = arith.addf %121, %123 : vector<4x16xf32>
    %125 = tpu.reciprocal %119 {approx = true} : vector<4x1xf32> -> vector<4x1xf32>
    %126 = vector.broadcast %125 : vector<4x1xf32> to vector<4x16xf32>
    %127 = arith.mulf %124, %126 : vector<4x16xf32>
    %c4 = arith.constant 4 : index
    %c0_54 = arith.constant 0 : index
    %128 = vector.load %arg20[%c4, %c0_54] : memref<16x32xf32, #tpu.memory_space<vmem>>, vector<4x16xf32>
    tpu.vector_store %arg20[%c4, %c0_54], %127 {strides = array<i32>} : memref<16x32xf32, #tpu.memory_space<vmem>>, vector<4x16xf32>,
    %129 = vector.extract_strided_slice %92 {offsets = [0, 16], sizes = [4, 16], strides = [1, 1]} : vector<4x32xf32> to vector<4x16xf32>
    %130 = vector.extract_strided_slice %93 {offsets = [0, 0], sizes = [2, 16], strides = [1, 1]} : vector<2x32xf32> to vector<2x16xf32>
    %cst_55 = arith.constant dense<0.000000e+00> : vector<4x2xf32>
    %131 = tpu.matmul %129, %130, %cst_55 {dimension_numbers = #tpu.dot_dimension_numbers<[1], [1], [0], [0], [0, 0, 1, 0], [], []>} : vector<4x16xf32>, vector<2x16xf32>, vector<4x2xf32> -> vector<4x2xf32>
    %cst_56 = arith.constant 2.500000e-01 : f32
    %132 = vector.broadcast %cst_56 : f32 to vector<4x2xf32>
    %133 = arith.mulf %131, %132 : vector<4x2xf32>
    %134 = vector.extract_strided_slice %93 {offsets = [0, 16], sizes = [2, 16], strides = [1, 1]} : vector<2x32xf32> to vector<2x16xf32>
    %cst_57 = arith.constant dense<0.000000e+00> : vector<4x2xf32>
    %135 = tpu.matmul %129, %134, %cst_57 {dimension_numbers = #tpu.dot_dimension_numbers<[1], [1], [0], [0], [0, 0, 1, 0], [], []>} : vector<4x16xf32>, vector<2x16xf32>, vector<4x2xf32> -> vector<4x2xf32>
    %cst_58 = arith.constant 2.500000e-01 : f32
    %136 = vector.broadcast %cst_58 : f32 to vector<4x2xf32>
    %137 = arith.mulf %135, %136 : vector<4x2xf32>
    %cst_59 = arith.constant dense<0xFF800000> : vector<4xf32>
    %138 = vector.multi_reduction <maximumf>, %133, %cst_59 [1] : vector<4x2xf32> to vector<4xf32>
    %139 = vector.shape_cast %138 : vector<4xf32> to vector<4x1xf32>
    %cst_60 = arith.constant dense<0xFF800000> : vector<4xf32>
    %140 = vector.multi_reduction <maximumf>, %137, %cst_60 [1] : vector<4x2xf32> to vector<4xf32>
    %141 = vector.shape_cast %140 : vector<4xf32> to vector<4x1xf32>
    %142 = arith.maximumf %139, %141 : vector<4x1xf32>
    %143 = vector.broadcast %142 : vector<4x1xf32> to vector<4x2xf32>
    %144 = arith.subf %133, %143 : vector<4x2xf32>
    %145 = math.exp %144 : vector<4x2xf32>
    %146 = vector.broadcast %142 : vector<4x1xf32> to vector<4x2xf32>
    %147 = arith.subf %137, %146 : vector<4x2xf32>
    %148 = math.exp %147 : vector<4x2xf32>
    %cst_61 = arith.constant dense<0.000000e+00> : vector<4xf32>
    %149 = vector.multi_reduction <add>, %145, %cst_61 [1] : vector<4x2xf32> to vector<4xf32>
    %150 = vector.shape_cast %149 : vector<4xf32> to vector<4x1xf32>
    %cst_62 = arith.constant dense<0.000000e+00> : vector<4xf32>
    %151 = vector.multi_reduction <add>, %148, %cst_62 [1] : vector<4x2xf32> to vector<4xf32>
    %152 = vector.shape_cast %151 : vector<4xf32> to vector<4x1xf32>
    %153 = arith.addf %150, %152 : vector<4x1xf32>
    %154 = vector.extract_strided_slice %94 {offsets = [0, 0], sizes = [2, 16], strides = [1, 1]} : vector<2x32xf32> to vector<2x16xf32>
    %cst_63 = arith.constant dense<0.000000e+00> : vector<4x16xf32>
    %155 = tpu.matmul %145, %154, %cst_63 {dimension_numbers = #tpu.dot_dimension_numbers<[1], [0], [0], [1], [0, 0, 1, 1], [], []>} : vector<4x2xf32>, vector<2x16xf32>, vector<4x16xf32> -> vector<4x16xf32>
    %156 = vector.extract_strided_slice %94 {offsets = [0, 16], sizes = [2, 16], strides = [1, 1]} : vector<2x32xf32> to vector<2x16xf32>
    %cst_64 = arith.constant dense<0.000000e+00> : vector<4x16xf32>
    %157 = tpu.matmul %148, %156, %cst_64 {dimension_numbers = #tpu.dot_dimension_numbers<[1], [0], [0], [1], [0, 0, 1, 1], [], []>} : vector<4x2xf32>, vector<2x16xf32>, vector<4x16xf32> -> vector<4x16xf32>
    %158 = arith.addf %155, %157 : vector<4x16xf32>
    %159 = tpu.reciprocal %153 {approx = true} : vector<4x1xf32> -> vector<4x1xf32>
    %160 = vector.broadcast %159 : vector<4x1xf32> to vector<4x16xf32>
    %161 = arith.mulf %158, %160 : vector<4x16xf32>
    %c4_65 = arith.constant 4 : index
    %c16_66 = arith.constant 16 : index
    %162 = vector.load %arg20[%c4_65, %c16_66] : memref<16x32xf32, #tpu.memory_space<vmem>>, vector<4x16xf32>
    tpu.vector_store %arg20[%c4_65, %c16_66], %161 {strides = array<i32>} : memref<16x32xf32, #tpu.memory_space<vmem>>, vector<4x16xf32>,
    %163 = vector.extract_strided_slice %0 {offsets = [8, 0], sizes = [8, 32], strides = [1, 1]} : vector<16x32xf32> to vector<8x32xf32>
    %cst_67 = arith.constant dense<0.000000e+00> : vector<4x32xf32>
    %164 = tpu.matmul %6, %163, %cst_67 {dimension_numbers = #tpu.dot_dimension_numbers<[1], [0], [0], [1], [0, 0, 1, 1], [], []>} : vector<4x8xf32>, vector<8x32xf32>, vector<4x32xf32> -> vector<4x32xf32>
    %cst_68 = arith.constant dense<0.000000e+00> : vector<4x32xf32>
    %165 = tpu.matmul %164, %8, %cst_68 {dimension_numbers = #tpu.dot_dimension_numbers<[1], [0], [0], [1], [0, 0, 1, 1], [], []>} : vector<4x32xf32>, vector<32x32xf32>, vector<4x32xf32> -> vector<4x32xf32>
    %166 = vector.broadcast %10 : vector<1x32xf32> to vector<4x32xf32>
    %167 = arith.addf %165, %166 : vector<4x32xf32>
    %cst_69 = arith.constant dense<0.000000e+00> : vector<4x32xf32>
    %168 = tpu.matmul %7, %163, %cst_69 {dimension_numbers = #tpu.dot_dimension_numbers<[1], [0], [0], [1], [0, 0, 1, 1], [], []>} : vector<4x8xf32>, vector<8x32xf32>, vector<4x32xf32> -> vector<4x32xf32>
    %cst_70 = arith.constant dense<0.000000e+00> : vector<4x32xf32>
    %169 = tpu.matmul %168, %9, %cst_70 {dimension_numbers = #tpu.dot_dimension_numbers<[1], [0], [0], [1], [0, 0, 1, 1], [], []>} : vector<4x32xf32>, vector<32x32xf32>, vector<4x32xf32> -> vector<4x32xf32>
    %170 = vector.broadcast %11 : vector<1x32xf32> to vector<4x32xf32>
    %171 = arith.addf %169, %170 : vector<4x32xf32>
    %172 = vector.extract_strided_slice %5 {offsets = [8, 0], sizes = [4, 32], strides = [1, 1]} : vector<16x32xf32> to vector<4x32xf32>
    %173 = vector.extract_strided_slice %167 {offsets = [0, 0], sizes = [2, 32], strides = [1, 1]} : vector<4x32xf32> to vector<2x32xf32>
    %174 = vector.extract_strided_slice %171 {offsets = [0, 0], sizes = [2, 32], strides = [1, 1]} : vector<4x32xf32> to vector<2x32xf32>
    %175 = vector.extract_strided_slice %172 {offsets = [0, 0], sizes = [4, 16], strides = [1, 1]} : vector<4x32xf32> to vector<4x16xf32>
    %176 = vector.extract_strided_slice %173 {offsets = [0, 0], sizes = [2, 16], strides = [1, 1]} : vector<2x32xf32> to vector<2x16xf32>
    %cst_71 = arith.constant dense<0.000000e+00> : vector<4x2xf32>
    %177 = tpu.matmul %175, %176, %cst_71 {dimension_numbers = #tpu.dot_dimension_numbers<[1], [1], [0], [0], [0, 0, 1, 0], [], []>} : vector<4x16xf32>, vector<2x16xf32>, vector<4x2xf32> -> vector<4x2xf32>
    %cst_72 = arith.constant 2.500000e-01 : f32
    %178 = vector.broadcast %cst_72 : f32 to vector<4x2xf32>
    %179 = arith.mulf %177, %178 : vector<4x2xf32>
    %180 = vector.extract_strided_slice %173 {offsets = [0, 16], sizes = [2, 16], strides = [1, 1]} : vector<2x32xf32> to vector<2x16xf32>
    %cst_73 = arith.constant dense<0.000000e+00> : vector<4x2xf32>
    %181 = tpu.matmul %175, %180, %cst_73 {dimension_numbers = #tpu.dot_dimension_numbers<[1], [1], [0], [0], [0, 0, 1, 0], [], []>} : vector<4x16xf32>, vector<2x16xf32>, vector<4x2xf32> -> vector<4x2xf32>
    %cst_74 = arith.constant 2.500000e-01 : f32
    %182 = vector.broadcast %cst_74 : f32 to vector<4x2xf32>
    %183 = arith.mulf %181, %182 : vector<4x2xf32>
    %cst_75 = arith.constant dense<0xFF800000> : vector<4xf32>
    %184 = vector.multi_reduction <maximumf>, %179, %cst_75 [1] : vector<4x2xf32> to vector<4xf32>
    %185 = vector.shape_cast %184 : vector<4xf32> to vector<4x1xf32>
    %cst_76 = arith.constant dense<0xFF800000> : vector<4xf32>
    %186 = vector.multi_reduction <maximumf>, %183, %cst_76 [1] : vector<4x2xf32> to vector<4xf32>
    %187 = vector.shape_cast %186 : vector<4xf32> to vector<4x1xf32>
    %188 = arith.maximumf %185, %187 : vector<4x1xf32>
    %189 = vector.broadcast %188 : vector<4x1xf32> to vector<4x2xf32>
    %190 = arith.subf %179, %189 : vector<4x2xf32>
    %191 = math.exp %190 : vector<4x2xf32>
    %192 = vector.broadcast %188 : vector<4x1xf32> to vector<4x2xf32>
    %193 = arith.subf %183, %192 : vector<4x2xf32>
    %194 = math.exp %193 : vector<4x2xf32>
    %cst_77 = arith.constant dense<0.000000e+00> : vector<4xf32>
    %195 = vector.multi_reduction <add>, %191, %cst_77 [1] : vector<4x2xf32> to vector<4xf32>
    %196 = vector.shape_cast %195 : vector<4xf32> to vector<4x1xf32>
    %cst_78 = arith.constant dense<0.000000e+00> : vector<4xf32>
    %197 = vector.multi_reduction <add>, %194, %cst_78 [1] : vector<4x2xf32> to vector<4xf32>
    %198 = vector.shape_cast %197 : vector<4xf32> to vector<4x1xf32>
    %199 = arith.addf %196, %198 : vector<4x1xf32>
    %200 = vector.extract_strided_slice %174 {offsets = [0, 0], sizes = [2, 16], strides = [1, 1]} : vector<2x32xf32> to vector<2x16xf32>
    %cst_79 = arith.constant dense<0.000000e+00> : vector<4x16xf32>
    %201 = tpu.matmul %191, %200, %cst_79 {dimension_numbers = #tpu.dot_dimension_numbers<[1], [0], [0], [1], [0, 0, 1, 1], [], []>} : vector<4x2xf32>, vector<2x16xf32>, vector<4x16xf32> -> vector<4x16xf32>
    %202 = vector.extract_strided_slice %174 {offsets = [0, 16], sizes = [2, 16], strides = [1, 1]} : vector<2x32xf32> to vector<2x16xf32>
    %cst_80 = arith.constant dense<0.000000e+00> : vector<4x16xf32>
    %203 = tpu.matmul %194, %202, %cst_80 {dimension_numbers = #tpu.dot_dimension_numbers<[1], [0], [0], [1], [0, 0, 1, 1], [], []>} : vector<4x2xf32>, vector<2x16xf32>, vector<4x16xf32> -> vector<4x16xf32>
    %204 = arith.addf %201, %203 : vector<4x16xf32>
    %205 = tpu.reciprocal %199 {approx = true} : vector<4x1xf32> -> vector<4x1xf32>
    %206 = vector.broadcast %205 : vector<4x1xf32> to vector<4x16xf32>
    %207 = arith.mulf %204, %206 : vector<4x16xf32>
    %c8 = arith.constant 8 : index
    %c0_81 = arith.constant 0 : index
    %208 = vector.load %arg20[%c8, %c0_81] : memref<16x32xf32, #tpu.memory_space<vmem>>, vector<4x16xf32>
    tpu.vector_store %arg20[%c8, %c0_81], %207 {strides = array<i32>} : memref<16x32xf32, #tpu.memory_space<vmem>>, vector<4x16xf32>,
    %209 = vector.extract_strided_slice %172 {offsets = [0, 16], sizes = [4, 16], strides = [1, 1]} : vector<4x32xf32> to vector<4x16xf32>
    %210 = vector.extract_strided_slice %173 {offsets = [0, 0], sizes = [2, 16], strides = [1, 1]} : vector<2x32xf32> to vector<2x16xf32>
    %cst_82 = arith.constant dense<0.000000e+00> : vector<4x2xf32>
    %211 = tpu.matmul %209, %210, %cst_82 {dimension_numbers = #tpu.dot_dimension_numbers<[1], [1], [0], [0], [0, 0, 1, 0], [], []>} : vector<4x16xf32>, vector<2x16xf32>, vector<4x2xf32> -> vector<4x2xf32>
    %cst_83 = arith.constant 2.500000e-01 : f32
    %212 = vector.broadcast %cst_83 : f32 to vector<4x2xf32>
    %213 = arith.mulf %211, %212 : vector<4x2xf32>
    %214 = vector.extract_strided_slice %173 {offsets = [0, 16], sizes = [2, 16], strides = [1, 1]} : vector<2x32xf32> to vector<2x16xf32>
    %cst_84 = arith.constant dense<0.000000e+00> : vector<4x2xf32>
    %215 = tpu.matmul %209, %214, %cst_84 {dimension_numbers = #tpu.dot_dimension_numbers<[1], [1], [0], [0], [0, 0, 1, 0], [], []>} : vector<4x16xf32>, vector<2x16xf32>, vector<4x2xf32> -> vector<4x2xf32>
    %cst_85 = arith.constant 2.500000e-01 : f32
    %216 = vector.broadcast %cst_85 : f32 to vector<4x2xf32>
    %217 = arith.mulf %215, %216 : vector<4x2xf32>
    %cst_86 = arith.constant dense<0xFF800000> : vector<4xf32>
    %218 = vector.multi_reduction <maximumf>, %213, %cst_86 [1] : vector<4x2xf32> to vector<4xf32>
    %219 = vector.shape_cast %218 : vector<4xf32> to vector<4x1xf32>
    %cst_87 = arith.constant dense<0xFF800000> : vector<4xf32>
    %220 = vector.multi_reduction <maximumf>, %217, %cst_87 [1] : vector<4x2xf32> to vector<4xf32>
    %221 = vector.shape_cast %220 : vector<4xf32> to vector<4x1xf32>
    %222 = arith.maximumf %219, %221 : vector<4x1xf32>
    %223 = vector.broadcast %222 : vector<4x1xf32> to vector<4x2xf32>
    %224 = arith.subf %213, %223 : vector<4x2xf32>
    %225 = math.exp %224 : vector<4x2xf32>
    %226 = vector.broadcast %222 : vector<4x1xf32> to vector<4x2xf32>
    %227 = arith.subf %217, %226 : vector<4x2xf32>
    %228 = math.exp %227 : vector<4x2xf32>
    %cst_88 = arith.constant dense<0.000000e+00> : vector<4xf32>
    %229 = vector.multi_reduction <add>, %225, %cst_88 [1] : vector<4x2xf32> to vector<4xf32>
    %230 = vector.shape_cast %229 : vector<4xf32> to vector<4x1xf32>
    %cst_89 = arith.constant dense<0.000000e+00> : vector<4xf32>
    %231 = vector.multi_reduction <add>, %228, %cst_89 [1] : vector<4x2xf32> to vector<4xf32>
    %232 = vector.shape_cast %231 : vector<4xf32> to vector<4x1xf32>
    %233 = arith.addf %230, %232 : vector<4x1xf32>
    %234 = vector.extract_strided_slice %174 {offsets = [0, 0], sizes = [2, 16], strides = [1, 1]} : vector<2x32xf32> to vector<2x16xf32>
    %cst_90 = arith.constant dense<0.000000e+00> : vector<4x16xf32>
    %235 = tpu.matmul %225, %234, %cst_90 {dimension_numbers = #tpu.dot_dimension_numbers<[1], [0], [0], [1], [0, 0, 1, 1], [], []>} : vector<4x2xf32>, vector<2x16xf32>, vector<4x16xf32> -> vector<4x16xf32>
    %236 = vector.extract_strided_slice %174 {offsets = [0, 16], sizes = [2, 16], strides = [1, 1]} : vector<2x32xf32> to vector<2x16xf32>
    %cst_91 = arith.constant dense<0.000000e+00> : vector<4x16xf32>
    %237 = tpu.matmul %228, %236, %cst_91 {dimension_numbers = #tpu.dot_dimension_numbers<[1], [0], [0], [1], [0, 0, 1, 1], [], []>} : vector<4x2xf32>, vector<2x16xf32>, vector<4x16xf32> -> vector<4x16xf32>
    %238 = arith.addf %235, %237 : vector<4x16xf32>
    %239 = tpu.reciprocal %233 {approx = true} : vector<4x1xf32> -> vector<4x1xf32>
    %240 = vector.broadcast %239 : vector<4x1xf32> to vector<4x16xf32>
    %241 = arith.mulf %238, %240 : vector<4x16xf32>
    %c8_92 = arith.constant 8 : index
    %c16_93 = arith.constant 16 : index
    %242 = vector.load %arg20[%c8_92, %c16_93] : memref<16x32xf32, #tpu.memory_space<vmem>>, vector<4x16xf32>
    tpu.vector_store %arg20[%c8_92, %c16_93], %241 {strides = array<i32>} : memref<16x32xf32, #tpu.memory_space<vmem>>, vector<4x16xf32>,
    %243 = vector.extract_strided_slice %5 {offsets = [12, 0], sizes = [4, 32], strides = [1, 1]} : vector<16x32xf32> to vector<4x32xf32>
    %244 = vector.extract_strided_slice %167 {offsets = [2, 0], sizes = [2, 32], strides = [1, 1]} : vector<4x32xf32> to vector<2x32xf32>
    %245 = vector.extract_strided_slice %171 {offsets = [2, 0], sizes = [2, 32], strides = [1, 1]} : vector<4x32xf32> to vector<2x32xf32>
    %246 = vector.extract_strided_slice %243 {offsets = [0, 0], sizes = [4, 16], strides = [1, 1]} : vector<4x32xf32> to vector<4x16xf32>
    %247 = vector.extract_strided_slice %244 {offsets = [0, 0], sizes = [2, 16], strides = [1, 1]} : vector<2x32xf32> to vector<2x16xf32>
    %cst_94 = arith.constant dense<0.000000e+00> : vector<4x2xf32>
    %248 = tpu.matmul %246, %247, %cst_94 {dimension_numbers = #tpu.dot_dimension_numbers<[1], [1], [0], [0], [0, 0, 1, 0], [], []>} : vector<4x16xf32>, vector<2x16xf32>, vector<4x2xf32> -> vector<4x2xf32>
    %cst_95 = arith.constant 2.500000e-01 : f32
    %249 = vector.broadcast %cst_95 : f32 to vector<4x2xf32>
    %250 = arith.mulf %248, %249 : vector<4x2xf32>
    %251 = vector.extract_strided_slice %244 {offsets = [0, 16], sizes = [2, 16], strides = [1, 1]} : vector<2x32xf32> to vector<2x16xf32>
    %cst_96 = arith.constant dense<0.000000e+00> : vector<4x2xf32>
    %252 = tpu.matmul %246, %251, %cst_96 {dimension_numbers = #tpu.dot_dimension_numbers<[1], [1], [0], [0], [0, 0, 1, 0], [], []>} : vector<4x16xf32>, vector<2x16xf32>, vector<4x2xf32> -> vector<4x2xf32>
    %cst_97 = arith.constant 2.500000e-01 : f32
    %253 = vector.broadcast %cst_97 : f32 to vector<4x2xf32>
    %254 = arith.mulf %252, %253 : vector<4x2xf32>
    %cst_98 = arith.constant dense<0xFF800000> : vector<4xf32>
    %255 = vector.multi_reduction <maximumf>, %250, %cst_98 [1] : vector<4x2xf32> to vector<4xf32>
    %256 = vector.shape_cast %255 : vector<4xf32> to vector<4x1xf32>
    %cst_99 = arith.constant dense<0xFF800000> : vector<4xf32>
    %257 = vector.multi_reduction <maximumf>, %254, %cst_99 [1] : vector<4x2xf32> to vector<4xf32>
    %258 = vector.shape_cast %257 : vector<4xf32> to vector<4x1xf32>
    %259 = arith.maximumf %256, %258 : vector<4x1xf32>
    %260 = vector.broadcast %259 : vector<4x1xf32> to vector<4x2xf32>
    %261 = arith.subf %250, %260 : vector<4x2xf32>
    %262 = math.exp %261 : vector<4x2xf32>
    %263 = vector.broadcast %259 : vector<4x1xf32> to vector<4x2xf32>
    %264 = arith.subf %254, %263 : vector<4x2xf32>
    %265 = math.exp %264 : vector<4x2xf32>
    %cst_100 = arith.constant dense<0.000000e+00> : vector<4xf32>
    %266 = vector.multi_reduction <add>, %262, %cst_100 [1] : vector<4x2xf32> to vector<4xf32>
    %267 = vector.shape_cast %266 : vector<4xf32> to vector<4x1xf32>
    %cst_101 = arith.constant dense<0.000000e+00> : vector<4xf32>
    %268 = vector.multi_reduction <add>, %265, %cst_101 [1] : vector<4x2xf32> to vector<4xf32>
    %269 = vector.shape_cast %268 : vector<4xf32> to vector<4x1xf32>
    %270 = arith.addf %267, %269 : vector<4x1xf32>
    %271 = vector.extract_strided_slice %245 {offsets = [0, 0], sizes = [2, 16], strides = [1, 1]} : vector<2x32xf32> to vector<2x16xf32>
    %cst_102 = arith.constant dense<0.000000e+00> : vector<4x16xf32>
    %272 = tpu.matmul %262, %271, %cst_102 {dimension_numbers = #tpu.dot_dimension_numbers<[1], [0], [0], [1], [0, 0, 1, 1], [], []>} : vector<4x2xf32>, vector<2x16xf32>, vector<4x16xf32> -> vector<4x16xf32>
    %273 = vector.extract_strided_slice %245 {offsets = [0, 16], sizes = [2, 16], strides = [1, 1]} : vector<2x32xf32> to vector<2x16xf32>
    %cst_103 = arith.constant dense<0.000000e+00> : vector<4x16xf32>
    %274 = tpu.matmul %265, %273, %cst_103 {dimension_numbers = #tpu.dot_dimension_numbers<[1], [0], [0], [1], [0, 0, 1, 1], [], []>} : vector<4x2xf32>, vector<2x16xf32>, vector<4x16xf32> -> vector<4x16xf32>
    %275 = arith.addf %272, %274 : vector<4x16xf32>
    %276 = tpu.reciprocal %270 {approx = true} : vector<4x1xf32> -> vector<4x1xf32>
    %277 = vector.broadcast %276 : vector<4x1xf32> to vector<4x16xf32>
    %278 = arith.mulf %275, %277 : vector<4x16xf32>
    %c12 = arith.constant 12 : index
    %c0_104 = arith.constant 0 : index
    %279 = vector.load %arg20[%c12, %c0_104] : memref<16x32xf32, #tpu.memory_space<vmem>>, vector<4x16xf32>
    tpu.vector_store %arg20[%c12, %c0_104], %278 {strides = array<i32>} : memref<16x32xf32, #tpu.memory_space<vmem>>, vector<4x16xf32>,
    %280 = vector.extract_strided_slice %243 {offsets = [0, 16], sizes = [4, 16], strides = [1, 1]} : vector<4x32xf32> to vector<4x16xf32>
    %281 = vector.extract_strided_slice %244 {offsets = [0, 0], sizes = [2, 16], strides = [1, 1]} : vector<2x32xf32> to vector<2x16xf32>
    %cst_105 = arith.constant dense<0.000000e+00> : vector<4x2xf32>
    %282 = tpu.matmul %280, %281, %cst_105 {dimension_numbers = #tpu.dot_dimension_numbers<[1], [1], [0], [0], [0, 0, 1, 0], [], []>} : vector<4x16xf32>, vector<2x16xf32>, vector<4x2xf32> -> vector<4x2xf32>
    %cst_106 = arith.constant 2.500000e-01 : f32
    %283 = vector.broadcast %cst_106 : f32 to vector<4x2xf32>
    %284 = arith.mulf %282, %283 : vector<4x2xf32>
    %285 = vector.extract_strided_slice %244 {offsets = [0, 16], sizes = [2, 16], strides = [1, 1]} : vector<2x32xf32> to vector<2x16xf32>
    %cst_107 = arith.constant dense<0.000000e+00> : vector<4x2xf32>
    %286 = tpu.matmul %280, %285, %cst_107 {dimension_numbers = #tpu.dot_dimension_numbers<[1], [1], [0], [0], [0, 0, 1, 0], [], []>} : vector<4x16xf32>, vector<2x16xf32>, vector<4x2xf32> -> vector<4x2xf32>
    %cst_108 = arith.constant 2.500000e-01 : f32
    %287 = vector.broadcast %cst_108 : f32 to vector<4x2xf32>
    %288 = arith.mulf %286, %287 : vector<4x2xf32>
    %cst_109 = arith.constant dense<0xFF800000> : vector<4xf32>
    %289 = vector.multi_reduction <maximumf>, %284, %cst_109 [1] : vector<4x2xf32> to vector<4xf32>
    %290 = vector.shape_cast %289 : vector<4xf32> to vector<4x1xf32>
    %cst_110 = arith.constant dense<0xFF800000> : vector<4xf32>
    %291 = vector.multi_reduction <maximumf>, %288, %cst_110 [1] : vector<4x2xf32> to vector<4xf32>
    %292 = vector.shape_cast %291 : vector<4xf32> to vector<4x1xf32>
    %293 = arith.maximumf %290, %292 : vector<4x1xf32>
    %294 = vector.broadcast %293 : vector<4x1xf32> to vector<4x2xf32>
    %295 = arith.subf %284, %294 : vector<4x2xf32>
    %296 = math.exp %295 : vector<4x2xf32>
    %297 = vector.broadcast %293 : vector<4x1xf32> to vector<4x2xf32>
    %298 = arith.subf %288, %297 : vector<4x2xf32>
    %299 = math.exp %298 : vector<4x2xf32>
    %cst_111 = arith.constant dense<0.000000e+00> : vector<4xf32>
    %300 = vector.multi_reduction <add>, %296, %cst_111 [1] : vector<4x2xf32> to vector<4xf32>
    %301 = vector.shape_cast %300 : vector<4xf32> to vector<4x1xf32>
    %cst_112 = arith.constant dense<0.000000e+00> : vector<4xf32>
    %302 = vector.multi_reduction <add>, %299, %cst_112 [1] : vector<4x2xf32> to vector<4xf32>
    %303 = vector.shape_cast %302 : vector<4xf32> to vector<4x1xf32>
    %304 = arith.addf %301, %303 : vector<4x1xf32>
    %305 = vector.extract_strided_slice %245 {offsets = [0, 0], sizes = [2, 16], strides = [1, 1]} : vector<2x32xf32> to vector<2x16xf32>
    %cst_113 = arith.constant dense<0.000000e+00> : vector<4x16xf32>
    %306 = tpu.matmul %296, %305, %cst_113 {dimension_numbers = #tpu.dot_dimension_numbers<[1], [0], [0], [1], [0, 0, 1, 1], [], []>} : vector<4x2xf32>, vector<2x16xf32>, vector<4x16xf32> -> vector<4x16xf32>
    %307 = vector.extract_strided_slice %245 {offsets = [0, 16], sizes = [2, 16], strides = [1, 1]} : vector<2x32xf32> to vector<2x16xf32>
    %cst_114 = arith.constant dense<0.000000e+00> : vector<4x16xf32>
    %308 = tpu.matmul %299, %307, %cst_114 {dimension_numbers = #tpu.dot_dimension_numbers<[1], [0], [0], [1], [0, 0, 1, 1], [], []>} : vector<4x2xf32>, vector<2x16xf32>, vector<4x16xf32> -> vector<4x16xf32>
    %309 = arith.addf %306, %308 : vector<4x16xf32>
    %310 = tpu.reciprocal %304 {approx = true} : vector<4x1xf32> -> vector<4x1xf32>
    %311 = vector.broadcast %310 : vector<4x1xf32> to vector<4x16xf32>
    %312 = arith.mulf %309, %311 : vector<4x16xf32>
    %c12_115 = arith.constant 12 : index
    %c16_116 = arith.constant 16 : index
    %313 = vector.load %arg20[%c12_115, %c16_116] : memref<16x32xf32, #tpu.memory_space<vmem>>, vector<4x16xf32>
    tpu.vector_store %arg20[%c12_115, %c16_116], %312 {strides = array<i32>} : memref<16x32xf32, #tpu.memory_space<vmem>>, vector<4x16xf32>,
    %c0_117 = arith.constant 0 : index
    %c0_118 = arith.constant 0 : index
    %314 = vector.load %arg20[%c0_117, %c0_118] : memref<16x32xf32, #tpu.memory_space<vmem>>, vector<16x32xf32>
    %315 = arith.addf %314, %0 : vector<16x32xf32>
    %c0_119 = arith.constant 0 : index
    %c0_120 = arith.constant 0 : index
    %316 = vector.load %arg10[%c0_119, %c0_120] : memref<1x32xf32, #tpu.memory_space<vmem>>, vector<1x32xf32>
    %c0_121 = arith.constant 0 : index
    %c0_122 = arith.constant 0 : index
    %317 = vector.load %arg11[%c0_121, %c0_122] : memref<1x32xf32, #tpu.memory_space<vmem>>, vector<1x32xf32>
    %cst_123 = arith.constant dense<0.000000e+00> : vector<16xf32>
    %318 = vector.multi_reduction <add>, %315, %cst_123 [1] : vector<16x32xf32> to vector<16xf32>
    %319 = vector.shape_cast %318 : vector<16xf32> to vector<16x1xf32>
    %cst_124 = arith.constant 3.200000e+01 : f32
    %320 = vector.broadcast %cst_124 : f32 to vector<16x1xf32>
    %321 = arith.divf %319, %320 : vector<16x1xf32>
    %322 = vector.broadcast %321 : vector<16x1xf32> to vector<16x32xf32>
    %323 = arith.subf %315, %322 : vector<16x32xf32>
    %324 = arith.mulf %323, %323 : vector<16x32xf32>
    %cst_125 = arith.constant dense<0.000000e+00> : vector<16xf32>
    %325 = vector.multi_reduction <add>, %324, %cst_125 [1] : vector<16x32xf32> to vector<16xf32>
    %326 = vector.shape_cast %325 : vector<16xf32> to vector<16x1xf32>
    %cst_126 = arith.constant 3.200000e+01 : f32
    %327 = vector.broadcast %cst_126 : f32 to vector<16x1xf32>
    %328 = arith.divf %326, %327 : vector<16x1xf32>
    %329 = vector.broadcast %321 : vector<16x1xf32> to vector<16x32xf32>
    %330 = arith.subf %315, %329 : vector<16x32xf32>
    %cst_127 = arith.constant 9.99999974E-6 : f32
    %331 = vector.broadcast %cst_127 : f32 to vector<16x1xf32>
    %332 = arith.addf %328, %331 : vector<16x1xf32>
    %333 = math.rsqrt %332 : vector<16x1xf32>
    %334 = vector.broadcast %333 : vector<16x1xf32> to vector<16x32xf32>
    %335 = arith.mulf %330, %334 : vector<16x32xf32>
    %336 = vector.broadcast %316 : vector<1x32xf32> to vector<16x32xf32>
    %337 = arith.mulf %335, %336 : vector<16x32xf32>
    %338 = vector.broadcast %317 : vector<1x32xf32> to vector<16x32xf32>
    %339 = arith.addf %337, %338 : vector<16x32xf32>
    %c0_128 = arith.constant 0 : index
    %c0_129 = arith.constant 0 : index
    %340 = vector.load %arg12[%c0_128, %c0_129] : memref<32x64xf32, #tpu.memory_space<vmem>>, vector<32x64xf32>
    %cst_130 = arith.constant dense<0.000000e+00> : vector<16x64xf32>
    %341 = tpu.matmul %339, %340, %cst_130 {dimension_numbers = #tpu.dot_dimension_numbers<[1], [0], [0], [1], [0, 0, 1, 1], [], []>} : vector<16x32xf32>, vector<32x64xf32>, vector<16x64xf32> -> vector<16x64xf32>
    %c0_131 = arith.constant 0 : index
    %c0_132 = arith.constant 0 : index
    %342 = vector.load %arg13[%c0_131, %c0_132] : memref<1x64xf32, #tpu.memory_space<vmem>>, vector<1x64xf32>
    %343 = vector.broadcast %342 : vector<1x64xf32> to vector<16x64xf32>
    %344 = arith.addf %341, %343 : vector<16x64xf32>
    %c0_133 = arith.constant 0 : index
    %c0_134 = arith.constant 0 : index
    %345 = memref.load %arg14[%c0_133, %c0_134] : memref<1x1xf32, #tpu.memory_space<smem>>
    %cst_135 = arith.constant 0.000000e+00 : f32
    %346 = vector.broadcast %cst_135 : f32 to vector<16x64xf32>
    %347 = arith.cmpf oge, %344, %346 : vector<16x64xf32>
    %348 = vector.broadcast %345 : f32 to vector<16x64xf32>
    %349 = arith.mulf %348, %344 : vector<16x64xf32>
    %350 = arith.select %347, %344, %349 : vector<16x64xi1>, vector<16x64xf32>
    %c0_136 = arith.constant 0 : index
    %c0_137 = arith.constant 0 : index
    %351 = vector.load %arg15[%c0_136, %c0_137] : memref<64x32xf32, #tpu.memory_space<vmem>>, vector<64x32xf32>
    %cst_138 = arith.constant dense<0.000000e+00> : vector<16x32xf32>
    %352 = tpu.matmul %350, %351, %cst_138 {dimension_numbers = #tpu.dot_dimension_numbers<[1], [0], [0], [1], [0, 0, 1, 1], [], []>} : vector<16x64xf32>, vector<64x32xf32>, vector<16x32xf32> -> vector<16x32xf32>
    %c0_139 = arith.constant 0 : index
    %c0_140 = arith.constant 0 : index
    %353 = vector.load %arg16[%c0_139, %c0_140] : memref<1x32xf32, #tpu.memory_space<vmem>>, vector<1x32xf32>
    %354 = vector.broadcast %353 : vector<1x32xf32> to vector<16x32xf32>
    %355 = arith.addf %352, %354 : vector<16x32xf32>
    %356 = arith.addf %355, %339 : vector<16x32xf32>
    %c0_141 = arith.constant 0 : index
    %c0_142 = arith.constant 0 : index
    %357 = vector.load %arg17[%c0_141, %c0_142] : memref<1x32xf32, #tpu.memory_space<vmem>>, vector<1x32xf32>
    %c0_143 = arith.constant 0 : index
    %c0_144 = arith.constant 0 : index
    %358 = vector.load %arg18[%c0_143, %c0_144] : memref<1x32xf32, #tpu.memory_space<vmem>>, vector<1x32xf32>
    %cst_145 = arith.constant dense<0.000000e+00> : vector<16xf32>
    %359 = vector.multi_reduction <add>, %356, %cst_145 [1] : vector<16x32xf32> to vector<16xf32>
    %360 = vector.shape_cast %359 : vector<16xf32> to vector<16x1xf32>
    %cst_146 = arith.constant 3.200000e+01 : f32
    %361 = vector.broadcast %cst_146 : f32 to vector<16x1xf32>
    %362 = arith.divf %360, %361 : vector<16x1xf32>
    %363 = vector.broadcast %362 : vector<16x1xf32> to vector<16x32xf32>
    %364 = arith.subf %356, %363 : vector<16x32xf32>
    %365 = arith.mulf %364, %364 : vector<16x32xf32>
    %cst_147 = arith.constant dense<0.000000e+00> : vector<16xf32>
    %366 = vector.multi_reduction <add>, %365, %cst_147 [1] : vector<16x32xf32> to vector<16xf32>
    %367 = vector.shape_cast %366 : vector<16xf32> to vector<16x1xf32>
    %cst_148 = arith.constant 3.200000e+01 : f32
    %368 = vector.broadcast %cst_148 : f32 to vector<16x1xf32>
    %369 = arith.divf %367, %368 : vector<16x1xf32>
    %370 = vector.broadcast %362 : vector<16x1xf32> to vector<16x32xf32>
    %371 = arith.subf %356, %370 : vector<16x32xf32>
    %cst_149 = arith.constant 9.99999974E-6 : f32
    %372 = vector.broadcast %cst_149 : f32 to vector<16x1xf32>
    %373 = arith.addf %369, %372 : vector<16x1xf32>
    %374 = math.rsqrt %373 : vector<16x1xf32>
    %375 = vector.broadcast %374 : vector<16x1xf32> to vector<16x32xf32>
    %376 = arith.mulf %371, %375 : vector<16x32xf32>
    %377 = vector.broadcast %357 : vector<1x32xf32> to vector<16x32xf32>
    %378 = arith.mulf %376, %377 : vector<16x32xf32>
    %379 = vector.broadcast %358 : vector<1x32xf32> to vector<16x32xf32>
    %380 = arith.addf %378, %379 : vector<16x32xf32>
    %c0_150 = arith.constant 0 : index
    %c0_151 = arith.constant 0 : index
    %381 = vector.load %arg19[%c0_150, %c0_151] : memref<16x32xf32, #tpu.memory_space<vmem>>, vector<16x32xf32>
    tpu.vector_store %arg19[%c0_150, %c0_151], %380 {strides = array<i32>} : memref<16x32xf32, #tpu.memory_space<vmem>>, vector<16x32xf32>,
    return
  }
  func.func @transform_0(%arg0: i32) -> (i32, i32) {
    %c0_i32 = arith.constant 0 : i32
    %c0_i32_0 = arith.constant 0 : i32
    %c0_i32_1 = arith.constant 0 : i32
    return %c0_i32, %c0_i32_0 : i32, i32
  }
  func.func @transform_1(%arg0: i32) -> (i32, i32) {
    %c0_i32 = arith.constant 0 : i32
    %c0_i32_0 = arith.constant 0 : i32
    %c0_i32_1 = arith.constant 0 : i32
    return %c0_i32, %c0_i32_0 : i32, i32
  }
  func.func @transform_2(%arg0: i32) -> (i32, i32) {
    %c0_i32 = arith.constant 0 : i32
    %c0_i32_0 = arith.constant 0 : i32
    %c0_i32_1 = arith.constant 0 : i32
    return %c0_i32, %c0_i32_0 : i32, i32
  }
  func.func @transform_3(%arg0: i32) -> (i32, i32) {
    %c0_i32 = arith.constant 0 : i32
    %c0_i32_0 = arith.constant 0 : i32
    %c0_i32_1 = arith.constant 0 : i32
    return %c0_i32, %c0_i32_0 : i32, i32
  }
  func.func @transform_4(%arg0: i32) -> (i32, i32) {
    %c0_i32 = arith.constant 0 : i32
    %c0_i32_0 = arith.constant 0 : i32
    %c0_i32_1 = arith.constant 0 : i32
    return %c0_i32, %c0_i32_0 : i32, i32
  }
  func.func @transform_5(%arg0: i32) -> (i32, i32) {
    %c0_i32 = arith.constant 0 : i32
    %c0_i32_0 = arith.constant 0 : i32
    %c0_i32_1 = arith.constant 0 : i32
    return %c0_i32, %c0_i32_0 : i32, i32
  }
  func.func @transform_6(%arg0: i32) -> (i32, i32) {
    %c0_i32 = arith.constant 0 : i32
    %c0_i32_0 = arith.constant 0 : i32
    %c0_i32_1 = arith.constant 0 : i32
    return %c0_i32, %c0_i32_0 : i32, i32
  }
  func.func @transform_7(%arg0: i32) -> (i32, i32) {
    %c0_i32 = arith.constant 0 : i32
    %c0_i32_0 = arith.constant 0 : i32
    %c0_i32_1 = arith.constant 0 : i32
    return %c0_i32, %c0_i32_0 : i32, i32
  }
  func.func @transform_8(%arg0: i32) -> (i32, i32) {
    %c0_i32 = arith.constant 0 : i32
    %c0_i32_0 = arith.constant 0 : i32
    %c0_i32_1 = arith.constant 0 : i32
    return %c0_i32, %c0_i32_0 : i32, i32
  }
  func.func @transform_9(%arg0: i32) -> (i32, i32) {
    %c0_i32 = arith.constant 0 : i32
    %c0_i32_0 = arith.constant 0 : i32
    %c0_i32_1 = arith.constant 0 : i32
    return %c0_i32, %c0_i32_0 : i32, i32
  }
  func.func @transform_10(%arg0: i32) -> (i32, i32) {
    %c0_i32 = arith.constant 0 : i32
    %c0_i32_0 = arith.constant 0 : i32
    %c0_i32_1 = arith.constant 0 : i32
    return %c0_i32, %c0_i32_0 : i32, i32
  }
  func.func @transform_11(%arg0: i32) -> (i32, i32) {
    %c0_i32 = arith.constant 0 : i32
    %c0_i32_0 = arith.constant 0 : i32
    %c0_i32_1 = arith.constant 0 : i32
    return %c0_i32, %c0_i32_0 : i32, i32
  }
  func.func @transform_12(%arg0: i32) -> (i32, i32) {
    %c0_i32 = arith.constant 0 : i32
    %c0_i32_0 = arith.constant 0 : i32
    %c0_i32_1 = arith.constant 0 : i32
    return %c0_i32, %c0_i32_0 : i32, i32
  }
  func.func @transform_13(%arg0: i32) -> (i32, i32) {
    %c0_i32 = arith.constant 0 : i32
    %c0_i32_0 = arith.constant 0 : i32
    %c0_i32_1 = arith.constant 0 : i32
    return %c0_i32, %c0_i32_0 : i32, i32
  }
  func.func @transform_14(%arg0: i32) -> (i32, i32) {
    %c0_i32 = arith.constant 0 : i32
    %c0_i32_0 = arith.constant 0 : i32
    %c0_i32_1 = arith.constant 0 : i32
    return %c0_i32, %c0_i32_0 : i32, i32
  }
  func.func @transform_15(%arg0: i32) -> (i32, i32) {
    %c0_i32 = arith.constant 0 : i32
    %c0_i32_0 = arith.constant 0 : i32
    %c0_i32_1 = arith.constant 0 : i32
    return %c0_i32, %c0_i32_0 : i32, i32
  }
  func.func @transform_16(%arg0: i32) -> (i32, i32) {
    %c0_i32 = arith.constant 0 : i32
    %c0_i32_0 = arith.constant 0 : i32
    %c0_i32_1 = arith.constant 0 : i32
    return %c0_i32, %c0_i32_0 : i32, i32
  }
  func.func @transform_17(%arg0: i32) -> (i32, i32) {
    %c0_i32 = arith.constant 0 : i32
    %c0_i32_0 = arith.constant 0 : i32
    %c0_i32_1 = arith.constant 0 : i32
    return %c0_i32, %c0_i32_0 : i32, i32
  }
  func.func @transform_18(%arg0: i32) -> (i32, i32) {
    %c0_i32 = arith.constant 0 : i32
    %c0_i32_0 = arith.constant 0 : i32
    %c0_i32_1 = arith.constant 0 : i32
    return %c0_i32, %c0_i32_0 : i32, i32
  }
}

</mosaic_0001>

<bundles_post_ra>
// kernel: blocks_forward.1
= control target key start
LH: loop header
LB: loop body
LE: loop exit
PB: predicated region body
PF: predicated region fallthrough
CT: control target
= control target key end

     0   :  { %s4891_s0 = inlined_call_operand.vmem [shape: f32[16,32], index: 0, kind: input, shape index: {}]   ;;  %s4892_s1 = inlined_call_operand.vmem [shape: f32[4,8], index: 1, kind: input, shape index: {}]   ;;  %s4893_s2 = inlined_call_operand.vmem [shape: f32[4,8], index: 2, kind: input, shape index: {}]   ;;  %s4894_s3 = inlined_call_operand.vmem [shape: f32[32,32], index: 3, kind: input, shape index: {}]   ;;  %s4895_s4 = inlined_call_operand.vmem [shape: f32[1,32], index: 4, kind: input, shape index: {}]   ;;  %s4896_s5 = inlined_call_operand.vmem [shape: f32[32,32], index: 5, kind: input, shape index: {}]   ;;  %s4897_s6 = inlined_call_operand.vmem [shape: f32[1,32], index: 6, kind: input, shape index: {}]   ;;  %s4898_s7 = inlined_call_operand.vmem [shape: f32[32,32], index: 7, kind: input, shape index: {}]   ;;  %s4899_s8 = inlined_call_operand.vmem [shape: f32[1,32], index: 8, kind: input, shape index: {}]   ;;  %s4900_s9 = inlined_call_operand.vmem [shape: f32[1,32], index: 9, kind: input, shape index: {}]   ;;  %s4901_s10 = inlined_call_operand.vmem [shape: f32[1,32], index: 10, kind: input, shape index: {}]   ;;  %s4902_s11 = inlined_call_operand.vmem [shape: f32[32,64], index: 11, kind: input, shape index: {}]   ;;  %s4903_s12 = inlined_call_operand.vmem [shape: f32[1,64], index: 12, kind: input, shape index: {}]   ;;  %s4904_s13 = inlined_call_operand.<no memory space> [shape: f32[1,1], index: 13, kind: input, shape index: {}]   ;;  %s4905_s14 = inlined_call_operand.vmem [shape: f32[64,32], index: 14, kind: input, shape index: {}]   ;;  %s4906_s15 = inlined_call_operand.vmem [shape: f32[1,32], index: 15, kind: input, shape index: {}]   ;;  %s4907_s16 = inlined_call_operand.vmem [shape: f32[1,32], index: 16, kind: input, shape index: {}]   ;;  %s4908_s17 = inlined_call_operand.vmem [shape: f32[1,32], index: 17, kind: input, shape index: {}]   ;;  %s4909_s18 = inlined_call_operand.hbm [shape: f32[16,32], index: 18, kind: output, shape index: {}]  }
   0x1   :  { %4911 = sst [smem:[#allocation7_spill]] %s4891_s0 }
   0x2   :  { %4912 = sst [smem:[#allocation8_spill]] %s4892_s1 }
   0x3   :  { %4913 = sst [smem:[#allocation9_spill]] %s4893_s2 }
   0x4   :  { %4914 = sst [smem:[#allocation10_spill]] %s4904_s13 }
   0x5   :  { %s4915_s29 = sld [smem:[#allocation7_spill]]  ;;  %vm168_vm0 = vcmask 64512   ;;  %v4216_v2 = vmov 0.0   ;;  %vm4217_vm1 = vmmov 0   ;;  %v4332_v3 = vld [vmem:[%s4896_s5 + $0x18] sm:$0xff] }
   0x6   :  { %s4916_s13 = sld [smem:[#allocation8_spill]]  ;;  %3875 = vmatprep.subr.mxu1 %v4216_v2  ;;  %3877 = vmatprep.mubr.msk.f32.mxu1 %vm4217_vm1, %v4216_v2 }
   0xb   :  { %v61_v0 = vld [vmem:[%s4915_s29] sm:$0xff] }
   0xc   :  { %v4324_v1 = vld [vmem:[%s4916_s13] sm:$0xf]  ;;  %3876 = vmatpush3.msra.mxu1 %v61_v0 }
   0xd   :  { %24 = vsyncpa [#allocation5], 0  ;;  %3878 = vmatmul.mubr.msk.f32.vlgmr.msra.gmra.mxu1 %vm168_vm0, %v4324_v1  ;;  %3880 = vmatprep.subr.mxu1 %v4216_v2  ;;  %v4340_v4 = vld [vmem:[%s4896_s5 + $0x10] sm:$0xff]  ;;  %v4349_v5 = vld [vmem:[%s4896_s5 + $0x8] sm:$0xff]  ;;  %vm74_vm2 = vcmask 261120   ;;  %s4917_s20 = sld [smem:[#allocation9_spill]] }
   0xe   :  { %3881 = vmatpush3.msra.mxu1 %v4332_v3  ;;  %3888 = vmatprep.mubr.msk.f32.mxu1 %vm4217_vm1, %v4216_v2  ;;  %v4358_v6 = vld [vmem:[%s4896_s5] sm:$0xff]  ;;  %v66_v7 = vld [vmem:[%s4894_s3 + $0x18] sm:$0xff]  ;;  %v65_v8 = vld [vmem:[%s4894_s3 + $0x10] sm:$0xff]  ;;  %vm473_vm3 = vcmask 130048   ;;  %vm654_vm4 = vcmask 1041408   ;;  %vm626_vm5 = vcmask 11264  }
   0xf   :  { %3882 = vmatprep.subr.mxu1 %v4216_v2  ;;  %3872 = vmatprep.mubr.msk.f32.mxu0 %vm74_vm2, %v61_v0  ;;  %v64_v9 = vld [vmem:[%s4894_s3 + $0x8] sm:$0xff]  ;;  %v63_v10 = vld [vmem:[%s4894_s3] sm:$0xff]  ;;  %v4401_v15 = vld [vmem:[%s4898_s7 + $0x18] sm:$0xff]  ;;  %vm650_vm6 = vcmask 15360   ;;  %vm804_vm7 = vcmask 125952   ;;  %vm1124_vm8 = vcmask 257152  }
  0x10   :  { %3883 = vmatpush3.msra.mxu1 %v4340_v4  ;;  %3864 = vmatprep.subr.mxu0 %v66_v7  ;;  %v4378_v11 = vld [vmem:[%s4915_s29 + $0x8] sm:$0xff]  ;;  %v4406_v16 = vld [vmem:[%s4898_s7 + $0x10] sm:$0xff]  ;;  %v4420_v18 = vld [vmem:[%s4898_s7] sm:$0xff]  ;;  %s4918_s25 = sld [smem:[#allocation10_spill]]  ;;  %vm3517_vm11 = vcmask 523264   ;;  %s4220_s27 = smov [#allocation4]  }
  0x11   :  { %3884 = vmatprep.subr.mxu1 %v4216_v2  ;;  %3865 = vmatpush3.msra.mxu0 %v66_v7  ;;  %v4413_v17 = vld [vmem:[%s4898_s7 + $0x8] sm:$0xff]  ;;  %v3663_v20 = vld [vmem:[%s4895_s4] ss:$0 sm:$0xff]  ;;  %s4218_s7 = smov 112   ;;  %s3652_s28 = sshll.u32 %s4220_s27, 4  ;;  %s3653_s28 = int_to_ptr.vmem [resolvable:$true] %s3652_s28 }
  0x12   :  { %3885 = vmatpush3.msra.mxu1 %v4349_v5  ;;  %3866 = vmatprep.subr.mxu0 %v65_v8  ;;  %v4434_v22 = vld [vmem:[%s4897_s6] ss:$0 sm:$0xff]  ;;  %s4194_s5 = scalar_lea.vmem %s3653_s28, 256  ;;  %p4199_p1 = scmp.lt.s32.totalorder %s3653_s28, %s3653_s28 }
  0x13   :  { %3886 = vmatprep.subr.mxu1 %v4216_v2  ;;  %3867 = vmatpush3.msra.mxu0 %v65_v8  ;;  %v4391_v14 = vld [vmem:[%s4917_s20] sm:$0xf]  ;;  %p4195_p0 = scmp.ne.s32.totalorder %s3653_s28, %s4194_s5  ;;  %p4200_p2 = scmp.lt.s32.totalorder %s4194_s5, %s4194_s5 }
  0x14   :  { %3887 = vmatpush3.msra.mxu1 %v4358_v6  ;;  %3868 = vmatprep.subr.mxu0 %v64_v9  ;;  %v4462_v31 = vld [vmem:[%s4899_s8] ss:$0 sm:$0xff]  ;;  %s4219_s8 = smov 16  }
  0x15   :  { %3891 = vmatprep.subr.mxu1 %v4216_v2  ;;  %3869 = vmatpush3.msra.mxu0 %v64_v9  ;;  %p4201_p3 = por %p4200_p2, %p4199_p1 }
  0x16   :  { %3870 = vmatprep.subr.mxu0 %v63_v10 }
  0x17   :  { %3871 = vmatpush3.msra.mxu0 %v63_v10  ;;  %p4202_p4 = pnand %p4201_p3, %p4195_p0 }
  0x18   :  { %3873 = vmatmul.mubr.msk.f32.vlgmr.msra.gmra.mxu0 %vm74_vm2, %v4378_v11  ;;  %3907 = vmatprep.subr.mxu0 %v4216_v2 }
  0x19   :  { %3909 = vmatprep.mubr.msk.f32.mxu0 %vm4217_vm1, %v4216_v2 }
  0xcd   :  { %v238_v12 = vpop.f32.mrf.mxu1 }
  0xce   :  { %3889 = vmatmul.mubr.msk.f32.vlgmr.msra.gmra.mxu1 %vm74_vm2, %v238_v12 }
  0xcf   :  { %v3879_v13 = vpop.f32.mrf.mxu1  ;;  %3892 = vmatpush3.msra.mxu1 %v61_v0  ;;  %3893 = vmatprep.mubr.msk.f32.mxu1 %vm4217_vm1, %v4216_v2 }
  0xd0   :  { %3896 = vmatprep.subr.mxu1 %v4216_v2 }
  0xd2   :  { %3894 = vmatmul.mubr.msk.f32.vlgmr.msra.gmra.mxu1 %vm168_vm0, %v4391_v14 }
  0xd3   :  { %3904 = vmatprep.mubr.msk.f32.mxu1 %vm4217_vm1, %v4216_v2  ;;  %3897 = vmatpush3.msra.mxu1 %v4401_v15 }
  0xd4   :  { %3898 = vmatprep.subr.mxu1 %v4216_v2 }
  0xd5   :  { %3899 = vmatpush3.msra.mxu1 %v4406_v16 }
  0xd6   :  { %3900 = vmatprep.subr.mxu1 %v4216_v2 }
  0xd7   :  { %3901 = vmatpush3.msra.mxu1 %v4413_v17 }
  0xd8   :  { %3902 = vmatprep.subr.mxu1 %v4216_v2  ;;  %v3874_v19 = vpop.f32.mrf.mxu0 }
  0xd9   :  { %3903 = vmatpush3.msra.mxu1 %v4420_v18  ;;  %v4429_v21 = vadd.f32 %v3874_v19, %v3663_v20 }
  0xda   :  { %3917 = vmatprep.subr.mxu1 %v4216_v2  ;;  %v147_v23 = vpop.f32.mrf.mxu0 }
  0xdb   :  { %v4439_v27 = vadd.f32 %v3663_v20, %v147_v23 }
 0x18e   :  { %v317_v24 = vpop.f32.mrf.mxu1 }
 0x18f   :  { %v4437_v25 = vadd.f32 %v4434_v22, %v317_v24 }
 0x190   :  { %v3890_v26 = vpop.f32.mrf.mxu1 }
 0x191   :  { %551 = vrot.lane.b32.xlu0 %v4437_v25, %s4218_s7  ;;  %3908 = vmatpush3.xpose.msk.msra.mxu0 %vm473_vm3, %v4437_v25  ;;  %v1127_v10 = vrot.slane %v4437_v25, 2 }
 0x192   :  { %v390_v28 = vpop.f32.mrf.mxu1  ;;  %3912 = vmatprep.subr.mxu0 %v4216_v2 }
 0x193   :  { %3905 = vmatmul.mubr.msk.f32.vlgmr.msra.gmra.mxu1 %vm74_vm2, %v390_v28 }
 0x194   :  { %v3895_v29 = vpop.f32.mrf.mxu1  ;;  %3910 = vmatmul.mubr.msk.f32.vlgmr.msra.gmra.mxu0 %vm473_vm3, %v4439_v27  ;;  %3919 = vmatprep.mubr.msk.f32.mxu1 %vm4217_vm1, %v4216_v2 }
 0x195   :  { %3914 = vmatprep.mubr.msk.f32.mxu0 %vm4217_vm1, %v4216_v2 }
 0x203   :  { %v552_v30 = vpop.permute.xlu0 %551 }
 0x204   :  { %3913 = vmatpush3.xpose.msk.msra.mxu0 %vm473_vm3, %v552_v30 }
 0x205   :  { %3922 = vmatprep.subr.mxu0 %v4216_v2 }
 0x207   :  { %3915 = vmatmul.mubr.msk.f32.vlgmr.msra.gmra.mxu0 %vm473_vm3, %v4439_v27 }
 0x208   :  { %3924 = vmatprep.mubr.msk.f32.mxu0 %vm4217_vm1, %v4216_v2 }
 0x253   :  { %v469_v32 = vpop.f32.mrf.mxu1 }
 0x254   :  { %v4465_v33 = vadd.f32 %v4462_v31, %v469_v32  ;;  %v546_v34 = vpop.f32.mrf.mxu0 }
 0x255   :  { %v3906_v35 = vpop.f32.mrf.mxu1  ;;  %v550_v36 = vmul.f32 0.25, %v546_v34 }
 0x256   :  { %648 = vrot.lane.b32.xlu1 %v4465_v33, %s4218_s7  ;;  %3923 = vmatpush3.msk.msra.mxu0 %vm654_vm4, %v4465_v33  ;;  %v3911_v37 = vpop.f32.mrf.mxu0  ;;  %v4511_v9 = vrot.slane %v4465_v33, 2 }
 0x257   :  { %v627_v38 = vsel %vm626_vm5, %v550_v36, -inf  ;;  %3932 = vmatprep.subr.mxu0 %v4216_v2 }
 0x258   :  { %628 = vmax.xlane.f32.xlu0 %v627_v38 }
 0x2c7   :  { %v621_v39 = vpop.f32.mrf.mxu0 }
 0x2c8   :  { %v625_v40 = vmul.f32 0.25, %v621_v39  ;;  %v649_v41 = vpop.permute.xlu1 %648 }
 0x2c9   :  { %v3916_v42 = vpop.f32.mrf.mxu0  ;;  %3918 = vmatpush3.msk.msra.mxu1 %vm654_vm4, %v649_v41 }
 0x2ca   :  { %v630_v43 = vsel %vm626_vm5, %v625_v40, -inf  ;;  %3927 = vmatprep.subr.mxu1 %v4216_v2 }
 0x2cb   :  { %631 = vmax.xlane.f32.xlu1 %v630_v43 }
 0x2dc   :  { %806 = vrot.lane.b32.xlu1 %v4439_v27, %s4218_s7 }
 0x2e1   :  { %v629_v44 = vpop.xlane.xlu0 %628 }
 0x354   :  { %v632_v45 = vpop.xlane.xlu1 %631 }
 0x355   :  { %v633_v46 = vmax.f32 %v629_v44, %v632_v45 }
 0x357   :  { %v634_v47 = vsub.f32 %v550_v36, %v633_v46  ;;  %v637_v48 = vsub.f32 %v625_v40, %v633_v46 }
 0x358   :  { %v807_v53 = vpop.permute.xlu1 %806 }
 0x359   :  { %v635_v49 = vmul.f32 1.442695, %v634_v47  ;;  %v638_v50 = vmul.f32 1.442695, %v637_v48 }
 0x35b   :  { %4136 = vpow2.f32 %v635_v49 }
 0x35c   :  { %4138 = vpow2.f32 %v638_v50 }
 0x368   :  { %v4478_v51 = vpop.eup %4136 }
 0x369   :  { %v4480_v52 = vpop.eup %4138  ;;  %3925 = vmatmul.mubr.msk.f32.vlgmr.msra.gmra.mxu0 %vm650_vm6, %v4478_v51 }
 0x36a   :  { %3920 = vmatmul.mubr.msk.f32.vlgmr.msra.gmra.mxu1 %vm650_vm6, %v4480_v52  ;;  %3933 = vmatpush3.xpose.msk.msra.mxu0 %vm473_vm3, %v552_v30 }
 0x36b   :  { %3928 = vmatpush3.xpose.msk.msra.mxu1 %vm473_vm3, %v4437_v25  ;;  %3929 = vmatprep.mubr.msk.f32.mxu1 %vm4217_vm1, %v4216_v2  ;;  %v1126_v25 = vrot.slane %v4439_v27, 4 }
 0x36c   :  { %3934 = vmatprep.mubr.msk.f32.mxu0 %vm4217_vm1, %v4216_v2  ;;  %3937 = vmatprep.subr.mxu1 %v4216_v2 }
 0x36d   :  { %3942 = vmatprep.subr.mxu0 %v4216_v2  ;;  %3935 = vmatmul.mubr.msk.f32.vlgmr.msra.gmra.mxu0 %vm473_vm3, %v807_v53 }
 0x36e   :  { %3930 = vmatmul.mubr.msk.f32.vlgmr.msra.gmra.mxu1 %vm473_vm3, %v807_v53  ;;  %3943 = vmatpush3.msk.msra.mxu0 %vm654_vm4, %v4465_v33 }
 0x36f   :  { %3938 = vmatpush3.msk.msra.mxu1 %vm654_vm4, %v649_v41  ;;  %3939 = vmatprep.mubr.msk.f32.mxu1 %vm4217_vm1, %v4216_v2 }
 0x370   :  { %3944 = vmatprep.mubr.msk.f32.mxu0 %vm4217_vm1, %v4216_v2  ;;  %3947 = vmatprep.subr.mxu1 %v4216_v2 }
 0x371   :  { %3952 = vmatprep.subr.mxu0 %v4216_v2 }
 0x429   :  { %v798_v54 = vpop.f32.mrf.mxu0 }
 0x42a   :  { %v723_v55 = vpop.f32.mrf.mxu1 }
 0x42b   :  { %v4506_v56 = vadd.f32 %v798_v54, %v723_v55  ;;  %v3926_v57 = vpop.f32.mrf.mxu0 }
 0x42c   :  { %v3921_v58 = vpop.f32.mrf.mxu1 }
 0x42d   :  { %v947_v59 = vpop.f32.mrf.mxu0 }
 0x42e   :  { %v876_v60 = vpop.f32.mrf.mxu1  ;;  %v951_v61 = vmul.f32 0.25, %v947_v59 }
 0x42f   :  { %v880_v62 = vmul.f32 0.25, %v876_v60  ;;  %v3936_v63 = vpop.f32.mrf.mxu0 }
 0x430   :  { %v3931_v0 = vpop.f32.mrf.mxu1  ;;  %v955_v7 = vsel %vm626_vm5, %v951_v61, -inf }
 0x431   :  { %v952_v8 = vsel %vm626_vm5, %v880_v62, -inf  ;;  %956 = vmax.xlane.f32.xlu0 %v955_v7 }
 0x432   :  { %953 = vmax.xlane.f32.xlu1 %v952_v8 }
 0x443   :  { %1299 = vrot.lane.b32.xlu1 %v4511_v9, %s4218_s7 }
 0x447   :  { %1203 = vrot.lane.b32.xlu0 %v1127_v10, %s4218_s7 }
 0x4ba   :  { %v957_v12 = vpop.xlane.xlu0 %956 }
 0x4bb   :  { %v954_v13 = vpop.xlane.xlu1 %953 }
 0x4bc   :  { %v958_v19 = vmax.f32 %v954_v13, %v957_v12 }
 0x4be   :  { %v959_v20 = vsub.f32 %v880_v62, %v958_v19  ;;  %v962_v23 = vsub.f32 %v951_v61, %v958_v19  ;;  %v1204_v30 = vpop.permute.xlu0 %1203 }
 0x4bf   :  { %v1300_v32 = vpop.permute.xlu1 %1299 }
 0x4c0   :  { %v960_v24 = vmul.f32 1.442695, %v959_v20  ;;  %v963_v26 = vmul.f32 1.442695, %v962_v23 }
 0x4c2   :  { %4140 = vpow2.f32 %v960_v24 }
 0x4c3   :  { %4142 = vpow2.f32 %v963_v26 }
 0x4cf   :  { %v4517_v28 = vpop.eup %4140 }
 0x4d0   :  { %v4519_v29 = vpop.eup %4142  ;;  %3945 = vmatmul.mubr.msk.f32.vlgmr.msra.gmra.mxu0 %vm650_vm6, %v4517_v28 }
 0x4d1   :  { %3940 = vmatmul.mubr.msk.f32.vlgmr.msra.gmra.mxu1 %vm650_vm6, %v4519_v29  ;;  %3953 = vmatpush3.xpose.msk.msra.mxu0 %vm473_vm3, %v1204_v30 }
 0x4d2   :  { %3948 = vmatpush3.xpose.msk.msra.mxu1 %vm473_vm3, %v1127_v10  ;;  %3949 = vmatprep.mubr.msk.f32.mxu1 %vm4217_vm1, %v4216_v2 }
 0x4d3   :  { %3954 = vmatprep.mubr.msk.f32.mxu0 %vm4217_vm1, %v4216_v2  ;;  %3957 = vmatprep.subr.mxu1 %v4216_v2 }
 0x4d4   :  { %3962 = vmatprep.subr.mxu0 %v4216_v2  ;;  %3955 = vmatmul.mubr.msk.f32.vlgmr.msra.gmra.mxu0 %vm473_vm3, %v1126_v25 }
 0x4d5   :  { %3950 = vmatmul.mubr.msk.f32.vlgmr.msra.gmra.mxu1 %vm473_vm3, %v1126_v25  ;;  %3963 = vmatpush3.msk.msra.mxu0 %vm654_vm4, %v4511_v9 }
 0x4d6   :  { %3958 = vmatpush3.msk.msra.mxu1 %vm654_vm4, %v1300_v32  ;;  %3959 = vmatprep.mubr.msk.f32.mxu1 %vm4217_vm1, %v4216_v2 }
 0x4d7   :  { %3964 = vmatprep.mubr.msk.f32.mxu0 %vm4217_vm1, %v4216_v2  ;;  %3967 = vmatprep.subr.mxu1 %v4216_v2 }
 0x4d8   :  { %3972 = vmatprep.subr.mxu0 %v4216_v2 }
 0x590   :  { %v1114_v27 = vpop.f32.mrf.mxu0 }
 0x591   :  { %v1041_v33 = vpop.f32.mrf.mxu1 }
 0x592   :  { %v4545_v34 = vadd.f32 %v1114_v27, %v1041_v33  ;;  %v3946_v35 = vpop.f32.mrf.mxu0 }
 0x593   :  { %v3941_v36 = vpop.f32.mrf.mxu1 }
 0x594   :  { %v1273_v37 = vpop.f32.mrf.mxu0 }
 0x595   :  { %v1198_v38 = vpop.f32.mrf.mxu1  ;;  %v1277_v39 = vmul.f32 0.25, %v1273_v37 }
 0x596   :  { %v1202_v40 = vmul.f32 0.25, %v1198_v38  ;;  %v3956_v41 = vpop.f32.mrf.mxu0 }
 0x597   :  { %v3951_v42 = vpop.f32.mrf.mxu1  ;;  %v1281_v43 = vsel %vm626_vm5, %v1277_v39, -inf }
 0x598   :  { %v1278_v44 = vsel %vm626_vm5, %v1202_v40, -inf  ;;  %1282 = vmax.xlane.f32.xlu1 %v1281_v43 }
 0x599   :  { %1279 = vmax.xlane.f32.xlu0 %v1278_v44 }
 0x5a9   :  { %1454 = vrot.lane.b32.xlu1 %v1126_v25, %s4218_s7 }
 0x621   :  { %v1283_v45 = vpop.xlane.xlu1 %1282 }
 0x622   :  { %v1280_v46 = vpop.xlane.xlu0 %1279 }
 0x623   :  { %v1284_v47 = vmax.f32 %v1280_v46, %v1283_v45 }
 0x625   :  { %v1285_v48 = vsub.f32 %v1202_v40, %v1284_v47  ;;  %v1288_v49 = vsub.f32 %v1277_v39, %v1284_v47  ;;  %v1455_v57 = vpop.permute.xlu1 %1454 }
 0x627   :  { %v1286_v50 = vmul.f32 1.442695, %v1285_v48  ;;  %v1289_v53 = vmul.f32 1.442695, %v1288_v49 }
 0x629   :  { %4144 = vpow2.f32 %v1286_v50 }
 0x62a   :  { %4146 = vpow2.f32 %v1289_v53 }
 0x636   :  { %v4550_v54 = vpop.eup %4144 }
 0x637   :  { %v4552_v55 = vpop.eup %4146  ;;  %3965 = vmatmul.mubr.msk.f32.vlgmr.msra.gmra.mxu0 %vm650_vm6, %v4550_v54 }
 0x638   :  { %3960 = vmatmul.mubr.msk.f32.vlgmr.msra.gmra.mxu1 %vm650_vm6, %v4552_v55  ;;  %3973 = vmatpush3.xpose.msk.msra.mxu0 %vm473_vm3, %v1204_v30 }
 0x639   :  { %3968 = vmatpush3.xpose.msk.msra.mxu1 %vm473_vm3, %v1127_v10  ;;  %3969 = vmatprep.mubr.msk.f32.mxu1 %vm4217_vm1, %v4216_v2 }
 0x63a   :  { %3974 = vmatprep.mubr.msk.f32.mxu0 %vm4217_vm1, %v4216_v2  ;;  %3977 = vmatprep.subr.mxu1 %v4216_v2 }
 0x63b   :  { %3982 = vmatprep.subr.mxu0 %v4216_v2  ;;  %3975 = vmatmul.mubr.msk.f32.vlgmr.msra.gmra.mxu0 %vm473_vm3, %v1455_v57 }
 0x63c   :  { %3970 = vmatmul.mubr.msk.f32.vlgmr.msra.gmra.mxu1 %vm473_vm3, %v1455_v57  ;;  %3983 = vmatpush3.msk.msra.mxu0 %vm654_vm4, %v4511_v9 }
 0x63d   :  { %3978 = vmatpush3.msk.msra.mxu1 %vm654_vm4, %v1300_v32  ;;  %3979 = vmatprep.mubr.msk.f32.mxu1 %vm4217_vm1, %v4216_v2 }
 0x63e   :  { %3984 = vmatprep.mubr.msk.f32.mxu0 %vm4217_vm1, %v4216_v2  ;;  %3987 = vmatprep.subr.mxu1 %v4216_v2 }
 0x63f   :  { %3992 = vmatprep.subr.mxu0 %v4216_v2 }
 0x6f7   :  { %v1447_v58 = vpop.f32.mrf.mxu0 }
 0x6f8   :  { %v1372_v59 = vpop.f32.mrf.mxu1 }
 0x6f9   :  { %v4577_v60 = vadd.f32 %v1447_v58, %v1372_v59  ;;  %v3966_v61 = vpop.f32.mrf.mxu0 }
 0x6fa   :  { %v3961_v62 = vpop.f32.mrf.mxu1 }
 0x6fb   :  { %v1595_v63 = vpop.f32.mrf.mxu0 }
 0x6fc   :  { %v1524_v0 = vpop.f32.mrf.mxu1  ;;  %v1599_v7 = vmul.f32 0.25, %v1595_v63 }
 0x6fd   :  { %v1528_v8 = vmul.f32 0.25, %v1524_v0  ;;  %v3976_v9 = vpop.f32.mrf.mxu0 }
 0x6fe   :  { %v3971_v10 = vpop.f32.mrf.mxu1  ;;  %v1603_v12 = vsel %vm626_vm5, %v1599_v7, -inf }
 0x6ff   :  { %v1600_v13 = vsel %vm626_vm5, %v1528_v8, -inf  ;;  %1604 = vmax.xlane.f32.xlu0 %v1603_v12 }
 0x700   :  { %1601 = vmax.xlane.f32.xlu1 %v1600_v13 }
 0x788   :  { %v1605_v19 = vpop.xlane.xlu0 %1604 }
 0x789   :  { %v1602_v20 = vpop.xlane.xlu1 %1601 }
 0x78a   :  { %v1606_v23 = vmax.f32 %v1602_v20, %v1605_v19 }
 0x78c   :  { %v1607_v24 = vsub.f32 %v1528_v8, %v1606_v23  ;;  %v1610_v26 = vsub.f32 %v1599_v7, %v1606_v23 }
 0x78e   :  { %v1608_v30 = vmul.f32 1.442695, %v1607_v24  ;;  %v1611_v25 = vmul.f32 1.442695, %v1610_v26 }
 0x790   :  { %4148 = vpow2.f32 %v1608_v30 }
 0x791   :  { %4150 = vpow2.f32 %v1611_v25 }
 0x79d   :  { %v4581_v32 = vpop.eup %4148 }
 0x79e   :  { %v4583_v27 = vpop.eup %4150  ;;  %3985 = vmatmul.mubr.msk.f32.vlgmr.msra.gmra.mxu0 %vm650_vm6, %v4581_v32 }
 0x79f   :  { %3980 = vmatmul.mubr.msk.f32.vlgmr.msra.gmra.mxu1 %vm650_vm6, %v4583_v27  ;;  %3993 = vmatpush3.msra.mxu0 %v4332_v3 }
 0x7a0   :  { %3988 = vmatpush3.msra.mxu1 %v4378_v11  ;;  %3989 = vmatprep.mubr.msk.f32.mxu1 %vm4217_vm1, %v4216_v2 }
 0x7a1   :  { %3994 = vmatprep.subr.mxu0 %v4216_v2  ;;  %4000 = vmatprep.mubr.msk.f32.mxu0 %vm4217_vm1, %v4216_v2 }
 0x7a2   :  { %3995 = vmatpush3.msra.mxu0 %v4340_v4  ;;  %4003 = vmatprep.subr.mxu1 %v4216_v2 }
 0x7a3   :  { %3990 = vmatmul.mubr.msk.f32.vlgmr.msra.gmra.mxu1 %vm168_vm0, %v4324_v1  ;;  %3996 = vmatprep.subr.mxu0 %v4216_v2 }
 0x7a4   :  { %3997 = vmatpush3.msra.mxu0 %v4349_v5  ;;  %4004 = vmatpush3.msra.mxu1 %v4378_v11 }
 0x7a5   :  { %3998 = vmatprep.subr.mxu0 %v4216_v2  ;;  %4005 = vmatprep.mubr.msk.f32.mxu1 %vm4217_vm1, %v4216_v2 }
 0x7a6   :  { %3999 = vmatpush3.msra.mxu0 %v4358_v6  ;;  %4008 = vmatprep.subr.mxu1 %v4216_v2 }
 0x7a7   :  { %4006 = vmatmul.mubr.msk.f32.vlgmr.msra.gmra.mxu1 %vm168_vm0, %v4391_v14  ;;  %4019 = vmatprep.subr.mxu0 %v4216_v2 }
 0x7a8   :  { %4009 = vmatpush3.msra.mxu1 %v4401_v15  ;;  %4016 = vmatprep.mubr.msk.f32.mxu1 %vm4217_vm1, %v4216_v2 }
 0x7a9   :  { %4010 = vmatprep.subr.mxu1 %v4216_v2 }
 0x7aa   :  { %4011 = vmatpush3.msra.mxu1 %v4406_v16 }
 0x7ab   :  { %4012 = vmatprep.subr.mxu1 %v4216_v2 }
 0x7ac   :  { %4013 = vmatpush3.msra.mxu1 %v4413_v17 }
 0x7ad   :  { %4014 = vmatprep.subr.mxu1 %v4216_v2 }
 0x7ae   :  { %4015 = vmatpush3.msra.mxu1 %v4420_v18 }
 0x7af   :  { %4029 = vmatprep.subr.mxu1 %v4216_v2 }
 0x85e   :  { %v1762_v1 = vpop.f32.mrf.mxu0 }
 0x85f   :  { %v1689_v3 = vpop.f32.mrf.mxu1 }
 0x860   :  { %v4621_v4 = vadd.f32 %v1762_v1, %v1689_v3  ;;  %v3986_v5 = vpop.f32.mrf.mxu0 }
 0x861   :  { %v3981_v6 = vpop.f32.mrf.mxu1 }
 0x863   :  { %v1839_v11 = vpop.f32.mrf.mxu1 }
 0x864   :  { %4001 = vmatmul.mubr.msk.f32.vlgmr.msra.gmra.mxu0 %vm74_vm2, %v1839_v11 }
 0x865   :  { %v3991_v14 = vpop.f32.mrf.mxu1  ;;  %4021 = vmatprep.mubr.msk.f32.mxu0 %vm4217_vm1, %v4216_v2 }
 0x867   :  { %v1982_v15 = vpop.f32.mrf.mxu1 }
 0x868   :  { %4017 = vmatmul.mubr.msk.f32.vlgmr.msra.gmra.mxu1 %vm74_vm2, %v1982_v15 }
 0x869   :  { %v4007_v16 = vpop.f32.mrf.mxu1  ;;  %4031 = vmatprep.mubr.msk.f32.mxu1 %vm4217_vm1, %v4216_v2 }
 0x924   :  { %v1912_v17 = vpop.f32.mrf.mxu0 }
 0x925   :  { %v4630_v18 = vadd.f32 %v4434_v22, %v1912_v17 }
 0x926   :  { %v4002_v33 = vpop.f32.mrf.mxu0 }
 0x927   :  { %2136 = vrot.lane.b32.xlu0 %v4630_v18, %s4218_s7  ;;  %4020 = vmatpush3.xpose.msk.msra.mxu0 %vm473_vm3, %v4630_v18  ;;  %v2707_v30 = vrot.slane %v4630_v18, 2 }
 0x928   :  { %4024 = vmatprep.subr.mxu0 %v4216_v2  ;;  %v2055_v35 = vpop.f32.mrf.mxu1 }
 0x929   :  { %v4642_v36 = vadd.f32 %v4462_v31, %v2055_v35 }
 0x92a   :  { %4022 = vmatmul.mubr.msk.f32.vlgmr.msra.gmra.mxu0 %vm473_vm3, %v4429_v21  ;;  %v4018_v22 = vpop.f32.mrf.mxu1 }
 0x92b   :  { %4026 = vmatprep.mubr.msk.f32.mxu0 %vm4217_vm1, %v4216_v2  ;;  %2232 = vrot.lane.b32.xlu1 %v4642_v36, %s4218_s7  ;;  %v4694_v26 = vrot.slane %v4642_v36, 2 }
 0x999   :  { %v2137_v37 = vpop.permute.xlu0 %2136 }
 0x99a   :  { %4025 = vmatpush3.xpose.msk.msra.mxu0 %vm473_vm3, %v2137_v37 }
 0x99b   :  { %4034 = vmatprep.subr.mxu0 %v4216_v2 }
 0x99d   :  { %4027 = vmatmul.mubr.msk.f32.vlgmr.msra.gmra.mxu0 %vm473_vm3, %v4429_v21  ;;  %v2233_v41 = vpop.permute.xlu1 %2232 }
 0x99e   :  { %4035 = vmatpush3.msk.msra.mxu0 %vm654_vm4, %v4642_v36  ;;  %4036 = vmatprep.mubr.msk.f32.mxu0 %vm4217_vm1, %v4216_v2 }
 0x99f   :  { %4044 = vmatprep.subr.mxu0 %v4216_v2  ;;  %4030 = vmatpush3.msk.msra.mxu1 %vm654_vm4, %v2233_v41 }
 0x9a0   :  { %4039 = vmatprep.subr.mxu1 %v4216_v2 }
 0x9ea   :  { %v2131_v31 = vpop.f32.mrf.mxu0 }
 0x9eb   :  { %v2135_v38 = vmul.f32 0.25, %v2131_v31 }
 0x9ec   :  { %v4023_v39 = vpop.f32.mrf.mxu0 }
 0x9ed   :  { %v2211_v40 = vsel %vm626_vm5, %v2135_v38, -inf }
 0x9ee   :  { %2212 = vmax.xlane.f32.xlu0 %v2211_v40 }
 0xa5d   :  { %v2206_v42 = vpop.f32.mrf.mxu0 }
 0xa5e   :  { %v2210_v43 = vmul.f32 0.25, %v2206_v42 }
 0xa5f   :  { %v4028_v44 = vpop.f32.mrf.mxu0 }
 0xa60   :  { %v2214_v45 = vsel %vm626_vm5, %v2210_v43, -inf }
 0xa61   :  { %2215 = vmax.xlane.f32.xlu1 %v2214_v45 }
 0xa72   :  { %2387 = vrot.lane.b32.xlu1 %v4429_v21, %s4218_s7 }
 0xa77   :  { %v2213_v46 = vpop.xlane.xlu0 %2212 }
 0xaea   :  { %v2216_v47 = vpop.xlane.xlu1 %2215 }
 0xaeb   :  { %v2217_v48 = vmax.f32 %v2213_v46, %v2216_v47 }
 0xaed   :  { %v2218_v49 = vsub.f32 %v2135_v38, %v2217_v48  ;;  %v2221_v50 = vsub.f32 %v2210_v43, %v2217_v48 }
 0xaee   :  { %v2388_v61 = vpop.permute.xlu1 %2387 }
 0xaef   :  { %v2219_v53 = vmul.f32 1.442695, %v2218_v49  ;;  %v2222_v57 = vmul.f32 1.442695, %v2221_v50 }
 0xaf1   :  { %4152 = vpow2.f32 %v2219_v53 }
 0xaf2   :  { %4154 = vpow2.f32 %v2222_v57 }
 0xafe   :  { %v4661_v58 = vpop.eup %4152 }
 0xaff   :  { %v4663_v59 = vpop.eup %4154  ;;  %4037 = vmatmul.mubr.msk.f32.vlgmr.msra.gmra.mxu0 %vm650_vm6, %v4661_v58 }
 0xb00   :  { %4032 = vmatmul.mubr.msk.f32.vlgmr.msra.gmra.mxu1 %vm650_vm6, %v4663_v59  ;;  %4045 = vmatpush3.xpose.msk.msra.mxu0 %vm473_vm3, %v2137_v37 }
 0xb01   :  { %4040 = vmatpush3.xpose.msk.msra.mxu1 %vm473_vm3, %v4630_v18  ;;  %4041 = vmatprep.mubr.msk.f32.mxu1 %vm4217_vm1, %v4216_v2  ;;  %v2706_v18 = vrot.slane %v4429_v21, 4 }
 0xb02   :  { %4046 = vmatprep.mubr.msk.f32.mxu0 %vm4217_vm1, %v4216_v2  ;;  %4049 = vmatprep.subr.mxu1 %v4216_v2 }
 0xb03   :  { %4054 = vmatprep.subr.mxu0 %v4216_v2  ;;  %4047 = vmatmul.mubr.msk.f32.vlgmr.msra.gmra.mxu0 %vm473_vm3, %v2388_v61 }
 0xb04   :  { %4042 = vmatmul.mubr.msk.f32.vlgmr.msra.gmra.mxu1 %vm473_vm3, %v2388_v61  ;;  %4055 = vmatpush3.msk.msra.mxu0 %vm654_vm4, %v4642_v36 }
 0xb05   :  { %4050 = vmatpush3.msk.msra.mxu1 %vm654_vm4, %v2233_v41  ;;  %4051 = vmatprep.mubr.msk.f32.mxu1 %vm4217_vm1, %v4216_v2 }
 0xb06   :  { %4056 = vmatprep.mubr.msk.f32.mxu0 %vm4217_vm1, %v4216_v2  ;;  %4059 = vmatprep.subr.mxu1 %v4216_v2 }
 0xb07   :  { %4064 = vmatprep.subr.mxu0 %v4216_v2 }
 0xbbf   :  { %v2380_v62 = vpop.f32.mrf.mxu0 }
 0xbc0   :  { %v2305_v63 = vpop.f32.mrf.mxu1 }
 0xbc1   :  { %v4689_v0 = vadd.f32 %v2380_v62, %v2305_v63  ;;  %v4038_v7 = vpop.f32.mrf.mxu0 }
 0xbc2   :  { %v4033_v8 = vpop.f32.mrf.mxu1 }
 0xbc3   :  { %v2528_v9 = vpop.f32.mrf.mxu0 }
 0xbc4   :  { %v2457_v10 = vpop.f32.mrf.mxu1  ;;  %v2532_v12 = vmul.f32 0.25, %v2528_v9 }
 0xbc5   :  { %v2461_v13 = vmul.f32 0.25, %v2457_v10  ;;  %v4048_v19 = vpop.f32.mrf.mxu0 }
 0xbc6   :  { %v4043_v20 = vpop.f32.mrf.mxu1  ;;  %v2536_v23 = vsel %vm626_vm5, %v2532_v12, -inf }
 0xbc7   :  { %v2533_v24 = vsel %vm626_vm5, %v2461_v13, -inf  ;;  %2537 = vmax.xlane.f32.xlu0 %v2536_v23 }
 0xbc8   :  { %2534 = vmax.xlane.f32.xlu1 %v2533_v24 }
 0xbd9   :  { %2879 = vrot.lane.b32.xlu1 %v4694_v26, %s4218_s7 }
 0xbdd   :  { %2783 = vrot.lane.b32.xlu0 %v2707_v30, %s4218_s7 }
 0xc50   :  { %v2538_v25 = vpop.xlane.xlu0 %2537 }
 0xc51   :  { %v2535_v1 = vpop.xlane.xlu1 %2534 }
 0xc52   :  { %v2539_v3 = vmax.f32 %v2535_v1, %v2538_v25  ;;  %v965_v25 = vsel %vm626_vm5, %v4517_v28, 0.0  ;;  %v1294_v1 = vsel %vm626_vm5, %v4552_v55, 0.0  ;;  %v1616_v28 = vsel %vm626_vm5, %v4583_v27, 0.0 }
 0xc54   :  { %v2540_v5 = vsub.f32 %v2461_v13, %v2539_v3  ;;  %v2543_v6 = vsub.f32 %v2532_v12, %v2539_v3  ;;  %v2784_v17 = vpop.permute.xlu0 %2783  ;;  %v968_v3 = vsel %vm626_vm5, %v4519_v29, 0.0 }
 0xc55   :  { %v2880_v33 = vpop.permute.xlu1 %2879 }
 0xc56   :  { %v2541_v11 = vmul.f32 1.442695, %v2540_v5  ;;  %v2544_v14 = vmul.f32 1.442695, %v2543_v6  ;;  %v2227_v5 = vsel %vm626_vm5, %v4663_v59, 0.0  ;;  %v1613_v6 = vsel %vm626_vm5, %v4581_v32, 0.0 }
 0xc58   :  { %4156 = vpow2.f32 %v2541_v11 }
 0xc59   :  { %4158 = vpow2.f32 %v2544_v14 }
 0xc65   :  { %v4700_v15 = vpop.eup %4156 }
 0xc66   :  { %v4702_v16 = vpop.eup %4158  ;;  %4057 = vmatmul.mubr.msk.f32.vlgmr.msra.gmra.mxu0 %vm650_vm6, %v4700_v15  ;;  %v2546_v29 = vsel %vm626_vm5, %v4700_v15, 0.0 }
 0xc67   :  { %4052 = vmatmul.mubr.msk.f32.vlgmr.msra.gmra.mxu1 %vm650_vm6, %v4702_v16  ;;  %4065 = vmatpush3.xpose.msk.msra.mxu0 %vm473_vm3, %v2784_v17  ;;  %v2549_v55 = vsel %vm626_vm5, %v4702_v16, 0.0 }
 0xc68   :  { %4060 = vmatpush3.xpose.msk.msra.mxu1 %vm473_vm3, %v2707_v30  ;;  %4061 = vmatprep.mubr.msk.f32.mxu1 %vm4217_vm1, %v4216_v2 }
 0xc69   :  { %4066 = vmatprep.mubr.msk.f32.mxu0 %vm4217_vm1, %v4216_v2  ;;  %4069 = vmatprep.subr.mxu1 %v4216_v2 }
 0xc6a   :  { %4074 = vmatprep.subr.mxu0 %v4216_v2  ;;  %4067 = vmatmul.mubr.msk.f32.vlgmr.msra.gmra.mxu0 %vm473_vm3, %v2706_v18 }
 0xc6b   :  { %4062 = vmatmul.mubr.msk.f32.vlgmr.msra.gmra.mxu1 %vm473_vm3, %v2706_v18  ;;  %4075 = vmatpush3.msk.msra.mxu0 %vm654_vm4, %v4694_v26 }
 0xc6c   :  { %4070 = vmatpush3.msk.msra.mxu1 %vm654_vm4, %v2880_v33  ;;  %4071 = vmatprep.mubr.msk.f32.mxu1 %vm4217_vm1, %v4216_v2 }
 0xc6d   :  { %4076 = vmatprep.mubr.msk.f32.mxu0 %vm4217_vm1, %v4216_v2  ;;  %4079 = vmatprep.subr.mxu1 %v4216_v2 }
 0xc6e   :  { %4084 = vmatprep.subr.mxu0 %v4216_v2 }
 0xd26   :  { %v2695_v21 = vpop.f32.mrf.mxu0 }
 0xd27   :  { %v2622_v35 = vpop.f32.mrf.mxu1 }
 0xd28   :  { %v4728_v36 = vadd.f32 %v2695_v21, %v2622_v35  ;;  %v4058_v22 = vpop.f32.mrf.mxu0 }
 0xd29   :  { %v4053_v37 = vpop.f32.mrf.mxu1 }
 0xd2a   :  { %v2853_v31 = vpop.f32.mrf.mxu0 }
 0xd2b   :  { %v2778_v38 = vpop.f32.mrf.mxu1  ;;  %v2857_v39 = vmul.f32 0.25, %v2853_v31 }
 0xd2c   :  { %v2782_v40 = vmul.f32 0.25, %v2778_v38  ;;  %v4068_v41 = vpop.f32.mrf.mxu0 }
 0xd2d   :  { %v4063_v42 = vpop.f32.mrf.mxu1  ;;  %v2861_v43 = vsel %vm626_vm5, %v2857_v39, -inf }
 0xd2e   :  { %v2858_v44 = vsel %vm626_vm5, %v2782_v40, -inf  ;;  %2862 = vmax.xlane.f32.xlu1 %v2861_v43  ;;  %v640_v42 = vsel %vm626_vm5, %v4478_v51, 0.0 }
 0xd2f   :  { %2859 = vmax.xlane.f32.xlu0 %v2858_v44  ;;  %v1291_v44 = vsel %vm626_vm5, %v4550_v54, 0.0 }
 0xd3f   :  { %3034 = vrot.lane.b32.xlu1 %v2706_v18, %s4218_s7 }
 0xdb7   :  { %v2863_v45 = vpop.xlane.xlu1 %2862 }
 0xdb8   :  { %v2860_v46 = vpop.xlane.xlu0 %2859 }
 0xdb9   :  { %v2864_v47 = vmax.f32 %v2860_v46, %v2863_v45  ;;  %v2224_v46 = vsel %vm626_vm5, %v4661_v58, 0.0 }
 0xdbb   :  { %v2865_v48 = vsub.f32 %v2782_v40, %v2864_v47  ;;  %v2868_v49 = vsub.f32 %v2857_v39, %v2864_v47  ;;  %v3035_v62 = vpop.permute.xlu1 %3034 }
 0xdbd   :  { %v2866_v50 = vmul.f32 1.442695, %v2865_v48  ;;  %v2869_v53 = vmul.f32 1.442695, %v2868_v49 }
 0xdbf   :  { %4160 = vpow2.f32 %v2866_v50 }
 0xdc0   :  { %4162 = vpow2.f32 %v2869_v53 }
 0xdcc   :  { %v4733_v57 = vpop.eup %4160 }
 0xdcd   :  { %v4163_v61 = vpop.eup %4162  ;;  %4077 = vmatmul.mubr.msk.f32.vlgmr.msra.gmra.mxu0 %vm650_vm6, %v4733_v57  ;;  %v2871_v48 = vsel %vm626_vm5, %v4733_v57, 0.0 }
 0xdce   :  { %4072 = vmatmul.mubr.msk.f32.vlgmr.msra.gmra.mxu1 %vm650_vm6, %v4163_v61  ;;  %4085 = vmatpush3.xpose.msk.msra.mxu0 %vm473_vm3, %v2784_v17 }
 0xdcf   :  { %4080 = vmatpush3.xpose.msk.msra.mxu1 %vm473_vm3, %v2707_v30  ;;  %4081 = vmatprep.mubr.msk.f32.mxu1 %vm4217_vm1, %v4216_v2 }
 0xdd0   :  { %4086 = vmatprep.mubr.msk.f32.mxu0 %vm4217_vm1, %v4216_v2  ;;  %4089 = vmatprep.subr.mxu1 %v4216_v2 }
 0xdd1   :  { %4094 = vmatprep.subr.mxu0 %v4216_v2  ;;  %4087 = vmatmul.mubr.msk.f32.vlgmr.msra.gmra.mxu0 %vm473_vm3, %v3035_v62 }
 0xdd2   :  { %4082 = vmatmul.mubr.msk.f32.vlgmr.msra.gmra.mxu1 %vm473_vm3, %v3035_v62  ;;  %4095 = vmatpush3.msk.msra.mxu0 %vm654_vm4, %v4694_v26 }
 0xdd3   :  { %4090 = vmatpush3.msk.msra.mxu1 %vm654_vm4, %v2880_v33  ;;  %4091 = vmatprep.mubr.msk.f32.mxu1 %vm4217_vm1, %v4216_v2 }
 0xdd4   :  { %4096 = vmatprep.mubr.msk.f32.mxu0 %vm4217_vm1, %v4216_v2  ;;  %v643_v2 = vsel %vm626_vm5, %v4480_v52, 0.0  ;;  %v2874_v52 = vsel %vm626_vm5, %v4163_v61, 0.0 }
 0xe8d   :  { %v3027_v63 = vpop.f32.mrf.mxu0 }
 0xe8e   :  { %v2952_v7 = vpop.f32.mrf.mxu1 }
 0xe8f   :  { %v4755_v8 = vadd.f32 %v3027_v63, %v2952_v7  ;;  %v4078_v9 = vpop.f32.mrf.mxu0 }
 0xe90   :  { %v4073_v10 = vpop.f32.mrf.mxu1 }
 0xe91   :  { %v3175_v12 = vpop.f32.mrf.mxu0 }
 0xe92   :  { %v3104_v13 = vpop.f32.mrf.mxu1  ;;  %v3179_v19 = vmul.f32 0.25, %v3175_v12 }
 0xe93   :  { %v3108_v20 = vmul.f32 0.25, %v3104_v13  ;;  %v4088_v23 = vpop.f32.mrf.mxu0 }
 0xe94   :  { %v4083_v24 = vpop.f32.mrf.mxu1  ;;  %v3183_v26 = vsel %vm626_vm5, %v3179_v19, -inf }
 0xe95   :  { %v3180_v30 = vsel %vm626_vm5, %v3108_v20, -inf  ;;  %3184 = vmax.xlane.f32.xlu1 %v3183_v26 }
 0xe96   :  { %3181 = vmax.xlane.f32.xlu0 %v3180_v30 }
 0xe99   :  { %644 = vadd.xlane.f32.xlu1 %v643_v2 }
 0xe9a   :  { %966 = vadd.xlane.f32.xlu0 %v965_v25 }
 0xe9d   :  { %1295 = vadd.xlane.f32.xlu1 %v1294_v1 }
 0xe9e   :  { %969 = vadd.xlane.f32.xlu0 %v968_v3 }
 0xea1   :  { %2228 = vadd.xlane.f32.xlu1 %v2227_v5 }
 0xea2   :  { %1614 = vadd.xlane.f32.xlu0 %v1613_v6  ;;  %v4192_v6 = vld [vmem:[%s4915_s29] sm:$0xff] }
 0xea5   :  { %2875 = vadd.xlane.f32.xlu1 %v2874_v52 }
 0xea6   :  { %1617 = vadd.xlane.f32.xlu0 %v1616_v28 }
 0xeaa   :  { %2547 = vadd.xlane.f32.xlu0 %v2546_v29 }
 0xeae   :  { %2550 = vadd.xlane.f32.xlu0 %v2549_v55 }
 0xf1e   :  { %v3185_v59 = vpop.xlane.xlu1 %3184 }
 0xf1f   :  { %v3182_v11 = vpop.xlane.xlu0 %3181 }
 0xf20   :  { %v3186_v32 = vmax.f32 %v3182_v11, %v3185_v59 }
 0xf22   :  { %v3187_v14 = vsub.f32 %v3108_v20, %v3186_v32  ;;  %v3190_v17 = vsub.f32 %v3179_v19, %v3186_v32  ;;  %v645_v53 = vpop.xlane.xlu1 %644 }
 0xf23   :  { %v967_v18 = vpop.xlane.xlu0 %966 }
 0xf24   :  { %v3188_v33 = vmul.f32 1.442695, %v3187_v14  ;;  %v3191_v21 = vmul.f32 1.442695, %v3190_v17 }
 0xf26   :  { %4164 = vpow2.f32 %v3188_v33  ;;  %v1296_v61 = vpop.xlane.xlu1 %1295 }
 0xf27   :  { %4166 = vpow2.f32 %v3191_v21  ;;  %v970_v27 = vpop.xlane.xlu0 %969 }
 0xf28   :  { %v971_v49 = vadd.f32 %v970_v27, %v967_v18  ;;  %v4193_v27 = vld [vmem:[%s4915_s29 + $0x8] sm:$0xff] }
 0xf2b   :  { %v1615_v35 = vpop.xlane.xlu0 %1614 }
 0xf2f   :  { %v1618_v22 = vpop.xlane.xlu0 %1617 }
 0xf30   :  { %v1619_v37 = vadd.f32 %v1618_v22, %v1615_v35 }
 0xf32   :  { %4168 = vrcp.f32 %v1619_v37 }
 0xf33   :  { %v4165_v15 = vpop.eup %4164  ;;  %v2548_v31 = vpop.xlane.xlu0 %2547 }
 0xf34   :  { %v4167_v38 = vpop.eup %4166  ;;  %4097 = vmatmul.mubr.msk.f32.vlgmr.msra.gmra.mxu0 %vm650_vm6, %v4165_v15  ;;  %v3193_v16 = vsel %vm626_vm5, %v4165_v15, 0.0 }
 0xf35   :  { %4092 = vmatmul.mubr.msk.f32.vlgmr.msra.gmra.mxu1 %vm650_vm6, %v4167_v38  ;;  %3194 = vadd.xlane.f32.xlu0 %v3193_v16  ;;  %v3196_v41 = vsel %vm626_vm5, %v4167_v38, 0.0 }
 0xf37   :  { %v2551_v39 = vpop.xlane.xlu0 %2550 }
 0xf38   :  { %v2552_v40 = vadd.f32 %v2551_v39, %v2548_v31 }
 0xf39   :  { %3197 = vadd.xlane.f32.xlu0 %v3196_v41 }
 0xf3a   :  { %4170 = vrcp.f32 %v2552_v40 }
 0xf3b   :  { %4172 = vrcp.f32 %v971_v49  ;;  %v3405_v49 = vld [vmem:[%s4902_s11 + $0x18] sm:$0xff] }
 0xf3c   :  { %4099 = vmatprep.subr.mxu1 %v3405_v49 }
 0xf3d   :  { %641 = vadd.xlane.f32.xlu0 %v640_v42  ;;  %4100 = vmatpush3.msra.mxu1 %v3405_v49 }
 0xf3f   :  { %v4169_v43 = vpop.eup %4168 }
 0xf40   :  { %v1767_v45 = vmul.f32 %v4169_v43, %v4621_v4 }
 0xf41   :  { %1292 = vadd.xlane.f32.xlu0 %v1291_v44 }
 0xf42   :  { %1769 = vrot.lane.b32.xlu1 %v1767_v45, %s4219_s8  ;;  %v3740_v45 = vld [vmem:[%s4900_s9] ss:$0 sm:$0xff] }
 0xf45   :  { %2225 = vadd.xlane.f32.xlu0 %v2224_v46 }
 0xf47   :  { %v4171_v47 = vpop.eup %4170 }
 0xf48   :  { %v2700_v51 = vmul.f32 %v4171_v47, %v4728_v36  ;;  %v4173_v54 = vpop.eup %4172  ;;  %v2229_v36 = vpop.xlane.xlu1 %2228  ;;  %v3741_v47 = vld [vmem:[%s4901_s10] ss:$0 sm:$0xff] }
 0xf49   :  { %2872 = vadd.xlane.f32.xlu0 %v2871_v48  ;;  %v1119_v4 = vmul.f32 %v4173_v54, %v4545_v34  ;;  %v3404_v54 = vld [vmem:[%s4902_s11 + $0x10] sm:$0xff] }
 0xf4a   :  { %2702 = vrot.lane.b32.xlu1 %v2700_v51, %s4219_s8  ;;  %4101 = vmatprep.subr.mxu1 %v3404_v54 }
 0xf4b   :  { %4102 = vmatpush3.msra.mxu1 %v3404_v54 }
 0xf4c   :  { %v2876_v12 = vpop.xlane.xlu1 %2875 }
 0xf5f   :  { %1121 = vrot.lane.b32.xlu0 %v1119_v4, %s4219_s8  ;;  %v3403_v4 = vld [vmem:[%s4902_s11 + $0x8] sm:$0xff] }
 0xf60   :  { %4103 = vmatprep.subr.mxu1 %v3403_v4 }
 0xf61   :  { %4104 = vmatpush3.msra.mxu1 %v3403_v4 }
 0xfb4   :  { %v1770_v30 = vpop.permute.xlu1 %1769 }
 0xfbc   :  { %v2703_v1 = vpop.permute.xlu1 %2702 }
 0xfbe   :  { %v3195_v50 = vpop.xlane.xlu0 %3194 }
 0xfc2   :  { %v3198_v58 = vpop.xlane.xlu0 %3197 }
 0xfc6   :  { %v642_v62 = vpop.xlane.xlu0 %641 }
 0xfc7   :  { %v646_v63 = vadd.f32 %v645_v53, %v642_v62  ;;  %v3509_v53 = vld [vmem:[%s4905_s14 + $0x38] sm:$0xff]  ;;  %v3506_v62 = vld [vmem:[%s4905_s14 + $0x20] sm:$0xff] }
 0xfc8   :  { %4110 = vmatprep.subr.mxu0 %v3509_v53 }
 0xfc9   :  { %4174 = vrcp.f32 %v646_v63  ;;  %4111 = vmatpush3.msra.mxu0 %v3509_v53 }
 0xfca   :  { %v1293_v57 = vpop.xlane.xlu0 %1292 }
 0xfcb   :  { %v1297_v7 = vadd.f32 %v1296_v61, %v1293_v57  ;;  %v3507_v61 = vld [vmem:[%s4905_s14 + $0x28] sm:$0xff] }
 0xfcd   :  { %4176 = vrcp.f32 %v1297_v7 }
 0xfce   :  { %v2226_v9 = vpop.xlane.xlu0 %2225 }
 0xfcf   :  { %v2230_v10 = vadd.f32 %v2229_v36, %v2226_v9 }
 0xfd1   :  { %4178 = vrcp.f32 %v2230_v10 }
 0xfd2   :  { %v2873_v13 = vpop.xlane.xlu0 %2872 }
 0xfd3   :  { %v2877_v19 = vadd.f32 %v2876_v12, %v2873_v13  ;;  %v3505_v13 = vld [vmem:[%s4905_s14 + $0x18] sm:$0xff] }
 0xfd5   :  { %4180 = vrcp.f32 %v2877_v19  ;;  %v3504_v19 = vld [vmem:[%s4905_s14 + $0x10] sm:$0xff] }
 0xfd6   :  { %v4175_v34 = vpop.eup %4174  ;;  %v1122_v23 = vpop.permute.xlu0 %1121 }
 0xfd7   :  { %v803_v20 = vmul.f32 %v4175_v34, %v4506_v56  ;;  %v3503_v34 = vld [vmem:[%s4905_s14 + $0x8] sm:$0xff] }
 0xfd9   :  { %805 = vst.msk [vmem:[#allocation2] sm:$0xf] %vm804_vm7, %v803_v20  ;;  %v3502_v20 = vld [vmem:[%s4905_s14] sm:$0xff] }
 0xfda   :  { %v4177_v24 = vpop.eup %4176  ;;  %1125 = vst.msk [vmem:[#allocation2] sm:$0xf] %vm1124_vm8, %v1122_v23  ;;  %v3742_v23 = vld [vmem:[%s4903_s12] ss:$0 sm:$0xff] }
 0xfdb   :  { %v1452_v26 = vmul.f32 %v4177_v24, %v4577_v60  ;;  %v3199_v60 = vadd.f32 %v3198_v58, %v3195_v50  ;;  %v3402_v50 = vld [vmem:[%s4902_s11] sm:$0xff]  ;;  %v3508_v58 = vld [vmem:[%s4905_s14 + $0x30] sm:$0xff] }
 0xfdc   :  { %4105 = vmatprep.subr.mxu1 %v3402_v50  ;;  %4112 = vmatprep.subr.mxu0 %v3508_v58 }
 0xfdd   :  { %1453 = vst.msk [vmem:[#allocation2 + $0x4] sm:$0xf] %vm804_vm7, %v1452_v26  ;;  %4182 = vrcp.f32 %v3199_v60  ;;  %4106 = vmatpush3.msra.mxu1 %v3402_v50  ;;  %4113 = vmatpush3.msra.mxu0 %v3508_v58  ;;  %v3745_v60 = vld [vmem:[%s4906_s15] ss:$0 sm:$0xff] }
 0xfde   :  { %v4179_v2 = vpop.eup %4178  ;;  %1772 = vst.msk [vmem:[#allocation2 + $0x4] sm:$0xf] %vm1124_vm8, %v1770_v30  ;;  %4114 = vmatprep.subr.mxu0 %v3507_v61  ;;  %v3497_v30 = vstv %s4918_s25 }
 0xfdf   :  { %v2385_v25 = vmul.f32 %v4179_v2, %v4689_v0  ;;  %4115 = vmatpush3.msra.mxu0 %v3507_v61 }
 0xfe0   :  { %4116 = vmatprep.subr.mxu0 %v3506_v62 }
 0xfe1   :  { %2386 = vst.msk [vmem:[#allocation2 + $0x8] sm:$0xf] %vm804_vm7, %v2385_v25  ;;  %4117 = vmatpush3.msra.mxu0 %v3506_v62 }
 0xfe2   :  { %v4181_v56 = vpop.eup %4180  ;;  %2705 = vst.msk [vmem:[#allocation2 + $0x8] sm:$0xf] %vm1124_vm8, %v2703_v1  ;;  %4118 = vmatprep.subr.mxu0 %v3505_v13 }
 0xfe3   :  { %v3032_v3 = vmul.f32 %v4181_v56, %v4755_v8  ;;  %4119 = vmatpush3.msra.mxu0 %v3505_v13 }
 0xfe4   :  { %4120 = vmatprep.subr.mxu0 %v3504_v19 }
 0xfe5   :  { %v3353_v5 = vld [vmem:[#allocation2] sm:$0xff]  ;;  %3033 = vst.msk [vmem:[#allocation2 + $0xc] sm:$0xf] %vm804_vm7, %v3032_v3  ;;  %4121 = vmatpush3.msra.mxu0 %v3504_v19 }
 0xfe6   :  { %v3355_v52 = vadd.f32 %v4192_v6, %v3353_v5  ;;  %4122 = vmatprep.subr.mxu0 %v3503_v34 }
 0xfe7   :  { %4123 = vmatpush3.msra.mxu0 %v3503_v34 }
 0xfe8   :  { %v3359_v28 = vsel %vm74_vm2, %v3355_v52, 0.0  ;;  %4124 = vmatprep.subr.mxu0 %v3502_v20 }
 0xfe9   :  { %3360 = vadd.xlane.f32.xlu1 %v3359_v28  ;;  %4125 = vmatpush3.msra.mxu0 %v3502_v20 }
 0xfea   :  { %v4183_v11 = vpop.eup %4182 }
 0xff4   :  { %v3342_v0 = vpop.f32.mrf.mxu0 }
 0xff5   :  { %v3269_v29 = vpop.f32.mrf.mxu1 }
 0xff6   :  { %v3343_v55 = vadd.f32 %v3342_v0, %v3269_v29  ;;  %v4098_v59 = vpop.f32.mrf.mxu0 }
 0xff7   :  { %v4093_v32 = vpop.f32.mrf.mxu1 }
 0xff8   :  { %v3347_v8 = vmul.f32 %v4183_v11, %v3343_v55 }
 0xffa   :  { %3349 = vrot.lane.b32.xlu0 %v3347_v8, %s4219_s8 }
0x106c   :  { %v3350_v14 = vpop.permute.xlu0 %3349 }
0x106d   :  { %3352 = vst.msk [vmem:[#allocation2 + $0xc] sm:$0xf] %vm1124_vm8, %v3350_v14 }
0x1072   :  { %v3361_v17 = vpop.xlane.xlu1 %3360 }
0x1073   :  { %v3366_v18 = vmul.f32 0.03125, %v3361_v17 }
0x1074   :  { %v3354_v33 = vld [vmem:[#allocation2 + $0x8] sm:$0xff] }
0x1075   :  { %v3368_v21 = vsub.f32 %v3355_v52, %v3366_v18  ;;  %v3356_v35 = vadd.f32 %v4193_v27, %v3354_v33 }
0x1077   :  { %v3362_v22 = vsel %vm74_vm2, %v3356_v35, 0.0  ;;  %v3370_v37 = vmul.f32 %v3368_v21, %v3368_v21 }
0x1078   :  { %3363 = vadd.xlane.f32.xlu0 %v3362_v22 }
0x1079   :  { %v3372_v15 = vsel %vm74_vm2, %v3370_v37, 0.0 }
0x107c   :  { %3373 = vadd.xlane.f32.xlu0 %v3372_v15 }
0x1101   :  { %v3364_v31 = vpop.xlane.xlu0 %3363 }
0x1102   :  { %v3367_v38 = vmul.f32 0.03125, %v3364_v31 }
0x1104   :  { %v3369_v16 = vsub.f32 %v3356_v35, %v3367_v38 }
0x1105   :  { %v3374_v39 = vpop.xlane.xlu0 %3373 }
0x1106   :  { %v3378_v40 = vmul.f32 0.03125, %v3374_v39  ;;  %v3371_v41 = vmul.f32 %v3369_v16, %v3369_v16 }
0x1108   :  { %v3380_v42 = vadd.f32 1e-05, %v3378_v40  ;;  %v3375_v43 = vsel %vm74_vm2, %v3371_v41, 0.0  ;;  %v3748_v41 = vld [vmem:[%s4907_s16] ss:$0 sm:$0xff] }
0x1109   :  { %3376 = vadd.xlane.f32.xlu1 %v3375_v43 }
0x110a   :  { %4184 = vrsqrt.f32 %v3380_v42 }
0x1117   :  { %v4185_v44 = vpop.eup %4184 }
0x1118   :  { %v3384_v46 = vmul.f32 %v4185_v44, %v3368_v21  ;;  %v3749_v44 = vld [vmem:[%s4908_s17] ss:$0 sm:$0xff] }
0x111a   :  { %v3392_v48 = vmul.f32 %v3740_v45, %v3384_v46 }
0x111c   :  { %v4825_v51 = vadd.f32 %v3741_v47, %v3392_v48 }
0x111e   :  { %4107 = vmatprep.mubr.msk.f32.mxu1 %vm74_vm2, %v4825_v51 }
0x1192   :  { %v3377_v63 = vpop.xlane.xlu1 %3376 }
0x1193   :  { %v3379_v57 = vmul.f32 0.03125, %v3377_v63 }
0x1195   :  { %v3381_v7 = vadd.f32 1e-05, %v3379_v57 }
0x1197   :  { %4186 = vrsqrt.f32 %v3381_v7 }
0x11a4   :  { %v4187_v36 = vpop.eup %4186 }
0x11a5   :  { %v3385_v9 = vmul.f32 %v4187_v36, %v3369_v16 }
0x11a7   :  { %v3393_v10 = vmul.f32 %v3740_v45, %v3385_v9 }
0x11a9   :  { %v3401_v12 = vadd.f32 %v3741_v47, %v3393_v10 }
0x11ab   :  { %4108 = vmatmul.mubr.msk.f32.vlgmr.msra.gmra.mxu1 %vm74_vm2, %v3401_v12 }
0x126b   :  { %v4109_v24 = vpop.f32.mrf.mxu1 }
0x126c   :  { %v3491_v26 = vadd.f32 %v4109_v24, %v3742_v23 }
0x126d   :  { %v3485_v2 = vpop.f32.mrf.mxu1 }
0x126e   :  { %v3486_v25 = vadd.f32 %v3742_v23, %v3485_v2  ;;  %v3499_v1 = vmul.f32 %v3497_v30, %v3491_v26  ;;  %vm3496_vm9 = vcmp.ge.f32.partialorder %v3491_v26, 0.0 }
0x1270   :  { %vm3495_vm10 = vcmp.ge.f32.partialorder %v3486_v25, 0.0  ;;  %v3498_v56 = vmul.f32 %v3497_v30, %v3486_v25  ;;  %v3501_v5 = vsel %vm3496_vm9, %v3491_v26, %v3499_v1 }
0x1272   :  { %v3500_v3 = vsel %vm3495_vm10, %v3486_v25, %v3498_v56 }
0x1273   :  { %4126 = vmatprep.mubr.msk.f32.mxu0 %vm3517_vm11, %v3500_v3 }
0x1274   :  { %4127 = vmatmul.mubr.msk.f32.vlgmr.msra.gmra.mxu0 %vm3517_vm11, %v3501_v5 }
0x1334   :  { %v4128_v6 = vpop.f32.mrf.mxu0 }
0x1335   :  { %v3596_v52 = vadd.f32 %v4128_v6, %v3745_v60 }
0x1336   :  { %v3590_v28 = vpop.f32.mrf.mxu0 }
0x1337   :  { %v3591_v0 = vadd.f32 %v3745_v60, %v3590_v28  ;;  %v3600_v29 = vadd.f32 %v3596_v52, %v3401_v12 }
0x1339   :  { %v3606_v55 = vsel %vm74_vm2, %v3600_v29, 0.0  ;;  %v3599_v59 = vadd.f32 %v3591_v0, %v4825_v51 }
0x133a   :  { %3607 = vadd.xlane.f32.xlu1 %v3606_v55 }
0x133b   :  { %v3603_v11 = vsel %vm74_vm2, %v3599_v59, 0.0 }
0x133c   :  { %3604 = vadd.xlane.f32.xlu0 %v3603_v11 }
0x13c3   :  { %v3608_v32 = vpop.xlane.xlu1 %3607 }
0x13c4   :  { %v3610_v8 = vmul.f32 0.03125, %v3608_v32 }
0x13c5   :  { %v3605_v14 = vpop.xlane.xlu0 %3604 }
0x13c6   :  { %v3612_v17 = vsub.f32 %v3600_v29, %v3610_v8  ;;  %v3609_v18 = vmul.f32 0.03125, %v3605_v14 }
0x13c8   :  { %v3611_v33 = vsub.f32 %v3599_v59, %v3609_v18  ;;  %v3614_v21 = vmul.f32 %v3612_v17, %v3612_v17 }
0x13ca   :  { %v3618_v27 = vsel %vm74_vm2, %v3614_v21, 0.0  ;;  %v3613_v35 = vmul.f32 %v3611_v33, %v3611_v33 }
0x13cb   :  { %3619 = vadd.xlane.f32.xlu1 %v3618_v27 }
0x13cc   :  { %v3615_v22 = vsel %vm74_vm2, %v3613_v35, 0.0 }
0x13cd   :  { %3616 = vadd.xlane.f32.xlu0 %v3615_v22 }
0x1454   :  { %v3620_v37 = vpop.xlane.xlu1 %3619 }
0x1455   :  { %v3622_v15 = vmul.f32 0.03125, %v3620_v37 }
0x1456   :  { %v3617_v31 = vpop.xlane.xlu0 %3616 }
0x1457   :  { %v3624_v38 = vadd.f32 1e-05, %v3622_v15  ;;  %v3621_v16 = vmul.f32 0.03125, %v3617_v31 }
0x1459   :  { %4188 = vrsqrt.f32 %v3624_v38  ;;  %v3623_v39 = vadd.f32 1e-05, %v3621_v16 }
0x145b   :  { %4190 = vrsqrt.f32 %v3623_v39 }
0x1466   :  { %v4189_v40 = vpop.eup %4188 }
0x1467   :  { %v3628_v42 = vmul.f32 %v4189_v40, %v3612_v17 }
0x1468   :  { %v4191_v43 = vpop.eup %4190 }
0x1469   :  { %v3627_v45 = vmul.f32 %v4191_v43, %v3611_v33  ;;  %v3636_v46 = vmul.f32 %v3748_v41, %v3628_v42 }
0x146b   :  { %v3635_v47 = vmul.f32 %v3748_v41, %v3627_v45  ;;  %v3644_v48 = vadd.f32 %v3749_v44, %v3636_v46 }
0x146d   :  { %v3643_v51 = vadd.f32 %v3749_v44, %v3635_v47  ;;  %3646 = vst.msk [vmem:[#allocation4 + $0x8] sm:$0xff] %vm74_vm2, %v3644_v48 }
0x146f   :  { %3645 = vst.msk [vmem:[#allocation4] sm:$0xff] %vm74_vm2, %v3643_v51 }
0x1470   :  { %4205 = shalt.err (!%p4202_p4)
}
0x1471   :  { %s4221_s16 = smov 128   ;;  %s4222_s17 = smov 8  }
0x1472   :  { %3658 = dma.vmem_to_hbm [thread:$0]  %s3653_s28, 256, %s4909_s18, [#allocation5], %s4221_s16, %s4221_s16, %s4222_s17  }
0x1473   :  { %4214 = dma.done.wait [#allocation5], 256  }
0x1474   :  { %4215 = vsyncadd [#allocation5], 4294967040 }
0x1475   :  { %3662 = vsyncpa [#allocation5], 1 }

</bundles_post_ra>
